<compile_context>
chip_gen: v5e
topology: v5e:2x2
jax: 0.10.0
libtpu: 0.0.40
codegen_flags: <defaults>
</compile_context>

<pallas_src>
import jax
import jax.numpy as jnp
from jax import lax
from jax.experimental import pallas as pl
from jax.experimental.pallas import tpu as pltpu

# ----------------------------- configuration --------------------------------
BATCH = 2
IN_CH = 3
IMG = 16                  # input spatial size (stands in for 224)
OS = 4                    # backbone output stride (stands in for 16)
FEAT = IMG // OS          # backbone feature spatial size (stands in for 14)
HW = FEAT * FEAT          # feature pixels per sample
M = BATCH * HW            # total feature rows
K0 = IN_CH * OS * OS      # space-to-depth channels feeding the stub
CF = 32                   # backbone feature channels (stands in for 2048)
HID = 16                  # ASPP hidden channels (stands in for 256)
ASPP_OUT = 16             # ASPP output channels (stands in for 256)
NCLASS = 4                # class_num
GLOB_HID = 8              # global_layers hidden (stands in for 256)
DILATIONS = (6, 12, 18)   # as in DeepLabV3.__init__
BN_EPS = 1e-5
LEAKY_SLOPE = 0.01        # nn.LeakyReLU() default


# ------------------------------ small helpers --------------------------------
def _leaky(v):
    return jnp.where(v > 0.0, v, LEAKY_SLOPE * v)


def _valid_taps(d, hf, wf):
    """Static analysis of a 3x3 conv with dilation=d, padding=d on (hf, wf).

    Returns (tap_index, oy, ox, ylo, yhi, xlo, xhi) for taps that overlap the
    valid input region; all-zero taps are skipped at trace time.
    """
    taps = []
    for ky in range(3):
        for kx in range(3):
            oy, ox = (ky - 1) * d, (kx - 1) * d
            ylo, yhi = max(0, -oy), min(hf, hf - oy)
            xlo, xhi = max(0, -ox), min(wf, wf - ox)
            if ylo < yhi and xlo < xhi:
                taps.append((ky * 3 + kx, oy, ox, ylo, yhi, xlo, xhi))
    return taps


def bilinear_matrix(out_size, in_size):
    """align_corners=True 1-D interpolation matrix of shape (out, in)."""
    i = jnp.arange(out_size, dtype=jnp.float32)
    if out_size > 1:
        src = i * (in_size - 1) / (out_size - 1)
    else:
        src = jnp.zeros_like(i)
    i0 = jnp.clip(jnp.floor(src).astype(jnp.int32), 0, in_size - 1)
    i1 = jnp.clip(i0 + 1, 0, in_size - 1)
    w1 = src - i0.astype(jnp.float32)
    w0 = 1.0 - w1
    A = jnp.zeros((out_size, in_size), jnp.float32)
    rows = jnp.arange(out_size)
    A = A.at[rows, i0].add(w0)
    A = A.at[rows, i1].add(w1)
    return A


def bn_eval_scale_shift(gamma, beta):
    # Fresh BatchNorm2d in eval mode: running_mean=0, running_var=1.
    scale = gamma / jnp.sqrt(1.0 + BN_EPS)
    shift = beta
    return scale, shift


# --------------------------- the fused Pallas kernel --------------------------
def _deeplab_fused_kernel(
    # inputs (order must match `inputs` tuple in deeplabv3_forward)
    x_ref,        # (M, K0)         bf16  space-to-depth input
    stem_w_ref,   # (K0, CF)        bf16  backbone-stub 1x1 projection
    w0_ref,       # (CF, HID)       bf16  ASPP 1x1 conv    (map_bn scale folded)
    w1_ref,       # (9*CF, HID)     bf16  ASPP 3x3 d=6     (map_bn scale folded)
    w2_ref,       # (9*CF, HID)     bf16  ASPP 3x3 d=12    (map_bn scale folded)
    w3_ref,       # (9*CF, HID)     bf16  ASPP 3x3 d=18    (map_bn scale folded)
    t0_ref, t1_ref, t2_ref, t3_ref,   # (1, HID) f32  map_bn shifts per branch
    w_red_ref,    # (4*HID, OUT)    bf16  red_conv         (red_bn scale folded)
    w_gp_ref,     # (CF, HID)       bf16  global_pooling_conv (gp_bn scale folded)
    gp_t_ref,     # (1, HID)        f32   gp_bn shift
    w_pred_ref,   # (HID, OUT)      bf16  pool_red_conv    (red_bn scale folded)
    red_t_ref,    # (1, OUT)        f32   red_bn shift
    w_cls_ref,    # (OUT, NCLASS)   bf16  classify weight
    b_cls_ref,    # (1, NCLASS)     f32   classify bias
    up_ref,       # (B*IMG*IMG, M)  f32   bilinear upsample operator (block-diag)
    w_g1_ref,     # (CF, GLOB_HID)  bf16  global head Linear 1
    b_g1_ref,     # (1, GLOB_HID)   f32
    w_g2_ref,     # (1, GLOB_HID)   f32   global head Linear 2 (as a row)
    b_g2_ref,     # (1, 1)          f32
    # outputs
    out_ref,      # (B*IMG*IMG, NCLASS) f32
    lv_ref,       # (B, 1)              f32
):
    f32 = jnp.float32
    bf16 = jnp.bfloat16

    # ---------------- backbone stub: 1x1 projection + ReLU -------------------
    feat = jnp.dot(x_ref[...], stem_w_ref[...], preferred_element_type=f32)
    feat = jnp.maximum(feat, 0.0)                    # (M, CF) f32
    feat_b = feat.astype(bf16)                       # MXU operand for ASPP dots

    w_red = w_red_ref[...]                           # (4*HID, OUT) bf16

    def branch_to_red(raw, b_idx, shift_ref):
        # map_bn (scale already folded into the conv weight) + LeakyReLU,
        # immediately contracted with this branch's rows of red_conv
        # (red_bn scale folded) -> the (M, 4*HID) concat never materializes.
        act = _leaky(raw + shift_ref[...]).astype(bf16)
        return jnp.dot(act, w_red[b_idx * HID:(b_idx + 1) * HID, :],
                       preferred_element_type=f32)

    # branch 0: 1x1 conv
    aspp_pre = branch_to_red(
        jnp.dot(feat_b, w0_ref[...], preferred_element_type=f32), 0, t0_ref)

    # branches 1..3: dilated 3x3 convs, accumulated tap-by-tap in VMEM
    for b_idx, (d, w_ref_b, t_ref_b) in enumerate(
            zip(DILATIONS, (w1_ref, w2_ref, w3_ref), (t1_ref, t2_ref, t3_ref)),
            start=1):
        w_full = w_ref_b[...]                        # (9*CF, HID) bf16
        raw = None
        for (tap, oy, ox, ylo, yhi, xlo, xhi) in _valid_taps(d, FEAT, FEAT):
            w_t = w_full[tap * CF:(tap + 1) * CF, :]
            if oy == 0 and ox == 0:                  # centre tap: plain matmul
                c = jnp.dot(feat_b, w_t, preferred_element_type=f32)
            else:
                # general shifted-window tap (not traced at this config since
                # dilation >= feature size -> only the centre tap overlaps).
                f4 = feat_b.reshape(BATCH, FEAT, FEAT, CF)
                src = f4[:, ylo + oy:yhi + oy, xlo + ox:xhi + ox, :]
                v = jnp.dot(src.reshape(-1, CF), w_t, preferred_element_type=f32)
                v = v.reshape(BATCH, yhi - ylo, xhi - xlo, HID)
                v = lax.pad(v, jnp.float32(0),
                            ((0, 0, 0), (ylo, FEAT - yhi, 0),
                             (xlo, FEAT - xhi, 0), (0, 0, 0)))
                c = v.reshape(M, HID)
            raw = c if raw is None else raw + c
        aspp_pre = aspp_pre + branch_to_red(raw, b_idx, t_ref_b)

    # -------------- global-pooling branch (in-kernel reduction) --------------
    pooled = jnp.mean(feat.reshape(BATCH, HW, CF), axis=1)      # (B, CF) f32
    pooled_b = pooled.astype(bf16)
    gp = jnp.dot(pooled_b, w_gp_ref[...], preferred_element_type=f32)
    gp = _leaky(gp + gp_t_ref[...]).astype(bf16)
    pool_vec = jnp.dot(gp, w_pred_ref[...], preferred_element_type=f32)  # (B, OUT)

    # pooling_size is None -> repeat over spatial positions; fuse the add,
    # red_bn shift and LeakyReLU into the same epilogue (no extra launch).
    y3 = (aspp_pre.reshape(BATCH, HW, ASPP_OUT)
          + pool_vec[:, None, :] + red_t_ref[...])
    aspp = _leaky(y3).reshape(M, ASPP_OUT).astype(bf16)

    # ----------- classify (1x1 + bias) fused with bilinear upsample ----------
    pred = jnp.dot(aspp, w_cls_ref[...], preferred_element_type=f32) + b_cls_ref[...]
    out_ref[...] = jnp.dot(up_ref[...], pred, preferred_element_type=f32)

    # ------------- global classifier head (avg_pool == spatial mean) ---------
    g1 = jnp.dot(pooled_b, w_g1_ref[...], preferred_element_type=f32) + b_g1_ref[...]
    g1 = jnp.maximum(g1, 0.0)                                   # ReLU, f32
    lv_ref[...] = (jnp.sum(g1 * w_g2_ref[...], axis=-1, keepdims=True)
                   + b_g2_ref[...])


# ----------------------------- parameter init --------------------------------
def init_params(key):
    ks = jax.random.split(key, 20)
    n = lambda k, shape, s=0.1: (s * jax.random.normal(k, shape)).astype(jnp.float32)
    p = {}
    # backbone stub (TODO(synk): stands in for ResNet101)
    p["stem_w"] = n(ks[0], (K0, CF))
    # ASPP map convs
    p["w_map0"] = n(ks[1], (CF, HID))                        # 1x1
    p["w_map1"] = n(ks[2], (3, 3, CF, HID)).reshape(9 * CF, HID)
    p["w_map2"] = n(ks[3], (3, 3, CF, HID)).reshape(9 * CF, HID)
    p["w_map3"] = n(ks[4], (3, 3, CF, HID)).reshape(9 * CF, HID)
    p["map_bn_g"] = 1.0 + n(ks[5], (4 * HID,))
    p["map_bn_b"] = n(ks[6], (4 * HID,))
    p["w_gp"] = n(ks[7], (CF, HID))
    p["gp_bn_g"] = 1.0 + n(ks[8], (HID,))
    p["gp_bn_b"] = n(ks[9], (HID,))
    p["w_red"] = n(ks[10], (4 * HID, ASPP_OUT))
    p["w_pool_red"] = n(ks[11], (HID, ASPP_OUT))
    p["red_bn_g"] = 1.0 + n(ks[12], (ASPP_OUT,))
    p["red_bn_b"] = n(ks[13], (ASPP_OUT,))
    # classify (1x1 conv with bias)
    p["w_cls"] = n(ks[14], (ASPP_OUT, NCLASS))
    p["b_cls"] = n(ks[15], (NCLASS,))
    # global_layers
    p["w_g1"] = n(ks[16], (CF, GLOB_HID))
    p["b_g1"] = n(ks[17], (GLOB_HID,))
    p["w_g2"] = n(ks[18], (GLOB_HID, 1))
    p["b_g2"] = n(ks[19], (1,))
    return p


# -------------------------------- forward ------------------------------------
def deeplabv3_forward(params, inp_nchw):
    nb, cin, himg, wimg = inp_nchw.shape
    assert (nb, cin, himg, wimg) == (BATCH, IN_CH, IMG, IMG)

    f32 = jnp.float32
    bf = lambda a: a.astype(jnp.bfloat16)
    row = lambda a: a.reshape(1, -1).astype(f32)

    # ---- one-time weight preprocessing: BN folding (eval mode) + bf16 cast ---
    map_s, map_t = bn_eval_scale_shift(params["map_bn_g"], params["map_bn_b"])
    gp_s, gp_sh = bn_eval_scale_shift(params["gp_bn_g"], params["gp_bn_b"])
    red_s, red_sh = bn_eval_scale_shift(params["red_bn_g"], params["red_bn_b"])

    w0 = bf(params["w_map0"] * map_s[0:HID][None, :])
    w1 = bf(params["w_map1"] * map_s[HID:2 * HID][None, :])
    w2 = bf(params["w_map2"] * map_s[2 * HID:3 * HID][None, :])
    w3 = bf(params["w_map3"] * map_s[3 * HID:4 * HID][None, :])
    t0, t1, t2, t3 = (row(map_t[i * HID:(i + 1) * HID]) for i in range(4))
    w_red = bf(params["w_red"] * red_s[None, :])
    w_gp = bf(params["w_gp"] * gp_s[None, :])
    gp_t = row(gp_sh)
    w_pred = bf(params["w_pool_red"] * red_s[None, :])
    red_t = row(red_sh)
    w_cls = bf(params["w_cls"])
    b_cls = row(params["b_cls"])
    w_g1 = bf(params["w_g1"])
    b_g1 = row(params["b_g1"])
    w_g2_row = row(params["w_g2"])           # (1, GLOB_HID)
    b_g2 = row(params["b_g2"])               # (1, 1)
    stem_w = bf(params["stem_w"])

    # ---- backbone stub front-end: space-to-depth so the stub is a matmul ----
    # TODO(synk): ResNet101 backbone not provided in the reference code.
    x = jnp.transpose(inp_nchw, (0, 2, 3, 1))
    x = x.reshape(BATCH, FEAT, OS, FEAT, OS, IN_CH)
    x = jnp.transpose(x, (0, 1, 3, 2, 4, 5)).reshape(M, K0)
    x = bf(x)

    # separable align_corners=True bilinear upsample as a single block-diagonal
    # (B*IMG*IMG, B*HW) operator -> classify + upsample fuse into one matmul.
    A = bilinear_matrix(IMG, FEAT)                             # (IMG, FEAT)
    U = jnp.kron(A, A)                                         # (IMG*IMG, HW)
    up = jnp.kron(jnp.eye(BATCH, dtype=f32), U)                # (B*IMG*IMG, M)

    inputs = (x, stem_w, w0, w1, w2, w3, t0, t1, t2, t3, w_red,
              w_gp, gp_t, w_pred, red_t, w_cls, b_cls, up,
              w_g1, b_g1, w_g2_row, b_g2)

    out_up, lv_dis = pl.pallas_call(
        _deeplab_fused_kernel,
        out_shape=(
            jax.ShapeDtypeStruct((BATCH * IMG * IMG, NCLASS), f32),
            jax.ShapeDtypeStruct((BATCH, 1), f32),
        ),
        grid_spec=pltpu.PrefetchScalarGridSpec(
            num_scalar_prefetch=0,
            grid=(1,),
            in_specs=[pl.BlockSpec(a.shape, lambda i: (0, 0)) for a in inputs],
            out_specs=[
                pl.BlockSpec((BATCH * IMG * IMG, NCLASS), lambda i: (0, 0)),
                pl.BlockSpec((BATCH, 1), lambda i: (0, 0)),
            ],
        ),
        compiler_params=pltpu.CompilerParams(
            dimension_semantics=("arbitrary",)),
    )(*inputs)

    output = jnp.transpose(out_up.reshape(BATCH, IMG, IMG, NCLASS), (0, 3, 1, 2))
    return output, lv_dis


# ----------------------------------- main ------------------------------------
if __name__ == "__main__":
    key = jax.random.PRNGKey(0)
    inp = jax.random.normal(key, (BATCH, IN_CH, IMG, IMG), dtype=jnp.float32)
    params = init_params(jax.random.PRNGKey(42))

    fwd = jax.jit(deeplabv3_forward)
    output, lv_dis = fwd(params, inp)
    output = jax.block_until_ready(output)
    lv_dis = jax.block_until_ready(lv_dis)

    assert output.shape == (BATCH, NCLASS, IMG, IMG), output.shape
    assert lv_dis.shape == (BATCH, 1), lv_dis.shape
    assert output.dtype == jnp.float32 and lv_dis.dtype == jnp.float32
    assert bool(jnp.all(jnp.isfinite(output))) and bool(jnp.all(jnp.isfinite(lv_dis)))
    print("KERNEL_OK")
</pallas_src>

<mosaic_0001>
module attributes {stable_mosaic.version = 11 : i64} {
  func.func @_deeplab_fused_kernel(%arg0: i32, %arg1: memref<32x48xbf16, #tpu.memory_space<vmem>>, %arg2: memref<48x32xbf16, #tpu.memory_space<vmem>>, %arg3: memref<32x16xbf16, #tpu.memory_space<vmem>>, %arg4: memref<288x16xbf16, #tpu.memory_space<vmem>>, %arg5: memref<288x16xbf16, #tpu.memory_space<vmem>>, %arg6: memref<288x16xbf16, #tpu.memory_space<vmem>>, %arg7: memref<1x16xf32, #tpu.memory_space<vmem>>, %arg8: memref<1x16xf32, #tpu.memory_space<vmem>>, %arg9: memref<1x16xf32, #tpu.memory_space<vmem>>, %arg10: memref<1x16xf32, #tpu.memory_space<vmem>>, %arg11: memref<64x16xbf16, #tpu.memory_space<vmem>>, %arg12: memref<32x16xbf16, #tpu.memory_space<vmem>>, %arg13: memref<1x16xf32, #tpu.memory_space<vmem>>, %arg14: memref<16x16xbf16, #tpu.memory_space<vmem>>, %arg15: memref<1x16xf32, #tpu.memory_space<vmem>>, %arg16: memref<16x4xbf16, #tpu.memory_space<vmem>>, %arg17: memref<1x4xf32, #tpu.memory_space<vmem>>, %arg18: memref<512x32xf32, #tpu.memory_space<vmem>>, %arg19: memref<32x8xbf16, #tpu.memory_space<vmem>>, %arg20: memref<1x8xf32, #tpu.memory_space<vmem>>, %arg21: memref<1x8xf32, #tpu.memory_space<vmem>>, %arg22: memref<1x1xf32, #tpu.memory_space<vmem>>, %arg23: memref<512x4xf32, #tpu.memory_space<vmem>>, %arg24: memref<2x1xf32, #tpu.memory_space<vmem>>) attributes {dimension_semantics = [#tpu.dimension_semantics<arbitrary>], iteration_bounds = array<i64: 1>, scalar_prefetch = 0 : i64, scratch_operands = 0 : i64, tpu.core_type = #tpu.core_type<tc>, window_params = [{pipeline_mode = #tpu.pipeline_mode<synchronous>, transform_indices = @transform_0, window_bounds = array<i64: 32, 48>}, {pipeline_mode = #tpu.pipeline_mode<synchronous>, transform_indices = @transform_1, window_bounds = array<i64: 48, 32>}, {pipeline_mode = #tpu.pipeline_mode<synchronous>, transform_indices = @transform_2, window_bounds = array<i64: 32, 16>}, {pipeline_mode = #tpu.pipeline_mode<synchronous>, transform_indices = @transform_3, window_bounds = array<i64: 288, 16>}, {pipeline_mode = #tpu.pipeline_mode<synchronous>, transform_indices = @transform_4, window_bounds = array<i64: 288, 16>}, {pipeline_mode = #tpu.pipeline_mode<synchronous>, transform_indices = @transform_5, window_bounds = array<i64: 288, 16>}, {pipeline_mode = #tpu.pipeline_mode<synchronous>, transform_indices = @transform_6, window_bounds = array<i64: 1, 16>}, {pipeline_mode = #tpu.pipeline_mode<synchronous>, transform_indices = @transform_7, window_bounds = array<i64: 1, 16>}, {pipeline_mode = #tpu.pipeline_mode<synchronous>, transform_indices = @transform_8, window_bounds = array<i64: 1, 16>}, {pipeline_mode = #tpu.pipeline_mode<synchronous>, transform_indices = @transform_9, window_bounds = array<i64: 1, 16>}, {pipeline_mode = #tpu.pipeline_mode<synchronous>, transform_indices = @transform_10, window_bounds = array<i64: 64, 16>}, {pipeline_mode = #tpu.pipeline_mode<synchronous>, transform_indices = @transform_11, window_bounds = array<i64: 32, 16>}, {pipeline_mode = #tpu.pipeline_mode<synchronous>, transform_indices = @transform_12, window_bounds = array<i64: 1, 16>}, {pipeline_mode = #tpu.pipeline_mode<synchronous>, transform_indices = @transform_13, window_bounds = array<i64: 16, 16>}, {pipeline_mode = #tpu.pipeline_mode<synchronous>, transform_indices = @transform_14, window_bounds = array<i64: 1, 16>}, {pipeline_mode = #tpu.pipeline_mode<synchronous>, transform_indices = @transform_15, window_bounds = array<i64: 16, 4>}, {pipeline_mode = #tpu.pipeline_mode<synchronous>, transform_indices = @transform_16, window_bounds = array<i64: 1, 4>}, {pipeline_mode = #tpu.pipeline_mode<synchronous>, transform_indices = @transform_17, window_bounds = array<i64: 512, 32>}, {pipeline_mode = #tpu.pipeline_mode<synchronous>, transform_indices = @transform_18, window_bounds = array<i64: 32, 8>}, {pipeline_mode = #tpu.pipeline_mode<synchronous>, transform_indices = @transform_19, window_bounds = array<i64: 1, 8>}, {pipeline_mode = #tpu.pipeline_mode<synchronous>, transform_indices = @transform_20, window_bounds = array<i64: 1, 8>}, {pipeline_mode = #tpu.pipeline_mode<synchronous>, transform_indices = @transform_21, window_bounds = array<i64: 1, 1>}, {pipeline_mode = #tpu.pipeline_mode<synchronous>, transform_indices = @transform_22, window_bounds = array<i64: 512, 4>}, {pipeline_mode = #tpu.pipeline_mode<synchronous>, transform_indices = @transform_23, window_bounds = array<i64: 2, 1>}]} {
    %c0 = arith.constant 0 : index
    %c0_0 = arith.constant 0 : index
    %0 = vector.load %arg1[%c0, %c0_0] : memref<32x48xbf16, #tpu.memory_space<vmem>>, vector<32x48xbf16>
    %c0_1 = arith.constant 0 : index
    %c0_2 = arith.constant 0 : index
    %1 = vector.load %arg2[%c0_1, %c0_2] : memref<48x32xbf16, #tpu.memory_space<vmem>>, vector<48x32xbf16>
    %cst = arith.constant dense<0.000000e+00> : vector<32x32xf32>
    %2 = tpu.matmul %0, %1, %cst {dimension_numbers = #tpu.dot_dimension_numbers<[1], [0], [0], [1], [0, 0, 1, 1], [], []>} : vector<32x48xbf16>, vector<48x32xbf16>, vector<32x32xf32> -> vector<32x32xf32>
    %cst_3 = arith.constant 0.000000e+00 : f32
    %3 = vector.broadcast %cst_3 : f32 to vector<32x32xf32>
    %4 = arith.maximumf %2, %3 : vector<32x32xf32>
    %5 = arith.truncf %4 : vector<32x32xf32> to vector<32x32xbf16>
    %c0_4 = arith.constant 0 : index
    %c0_5 = arith.constant 0 : index
    %6 = vector.load %arg11[%c0_4, %c0_5] : memref<64x16xbf16, #tpu.memory_space<vmem>>, vector<64x16xbf16>
    %c0_6 = arith.constant 0 : index
    %c0_7 = arith.constant 0 : index
    %7 = vector.load %arg3[%c0_6, %c0_7] : memref<32x16xbf16, #tpu.memory_space<vmem>>, vector<32x16xbf16>
    %cst_8 = arith.constant dense<0.000000e+00> : vector<32x16xf32>
    %8 = tpu.matmul %5, %7, %cst_8 {dimension_numbers = #tpu.dot_dimension_numbers<[1], [0], [0], [1], [0, 0, 1, 1], [], []>} : vector<32x32xbf16>, vector<32x16xbf16>, vector<32x16xf32> -> vector<32x16xf32>
    %c0_9 = arith.constant 0 : index
    %c0_10 = arith.constant 0 : index
    %9 = vector.load %arg7[%c0_9, %c0_10] : memref<1x16xf32, #tpu.memory_space<vmem>>, vector<1x16xf32>
    %10 = vector.broadcast %9 : vector<1x16xf32> to vector<32x16xf32>
    %11 = arith.addf %8, %10 : vector<32x16xf32>
    %cst_11 = arith.constant 0.000000e+00 : f32
    %12 = vector.broadcast %cst_11 : f32 to vector<32x16xf32>
    %13 = arith.cmpf ogt, %11, %12 : vector<32x16xf32>
    %cst_12 = arith.constant 0.00999999977 : f32
    %14 = vector.broadcast %cst_12 : f32 to vector<32x16xf32>
    %15 = arith.mulf %14, %11 : vector<32x16xf32>
    %16 = arith.select %13, %11, %15 : vector<32x16xi1>, vector<32x16xf32>
    %17 = arith.truncf %16 : vector<32x16xf32> to vector<32x16xbf16>
    %18 = vector.extract_strided_slice %6 {offsets = [0, 0], sizes = [16, 16], strides = [1, 1]} : vector<64x16xbf16> to vector<16x16xbf16>
    %cst_13 = arith.constant dense<0.000000e+00> : vector<32x16xf32>
    %19 = tpu.matmul %17, %18, %cst_13 {dimension_numbers = #tpu.dot_dimension_numbers<[1], [0], [0], [1], [0, 0, 1, 1], [], []>} : vector<32x16xbf16>, vector<16x16xbf16>, vector<32x16xf32> -> vector<32x16xf32>
    %c0_14 = arith.constant 0 : index
    %c0_15 = arith.constant 0 : index
    %20 = vector.load %arg4[%c0_14, %c0_15] : memref<288x16xbf16, #tpu.memory_space<vmem>>, vector<288x16xbf16>
    %21 = vector.extract_strided_slice %20 {offsets = [128, 0], sizes = [32, 16], strides = [1, 1]} : vector<288x16xbf16> to vector<32x16xbf16>
    %cst_16 = arith.constant dense<0.000000e+00> : vector<32x16xf32>
    %22 = tpu.matmul %5, %21, %cst_16 {dimension_numbers = #tpu.dot_dimension_numbers<[1], [0], [0], [1], [0, 0, 1, 1], [], []>} : vector<32x32xbf16>, vector<32x16xbf16>, vector<32x16xf32> -> vector<32x16xf32>
    %c0_17 = arith.constant 0 : index
    %c0_18 = arith.constant 0 : index
    %23 = vector.load %arg8[%c0_17, %c0_18] : memref<1x16xf32, #tpu.memory_space<vmem>>, vector<1x16xf32>
    %24 = vector.broadcast %23 : vector<1x16xf32> to vector<32x16xf32>
    %25 = arith.addf %22, %24 : vector<32x16xf32>
    %cst_19 = arith.constant 0.000000e+00 : f32
    %26 = vector.broadcast %cst_19 : f32 to vector<32x16xf32>
    %27 = arith.cmpf ogt, %25, %26 : vector<32x16xf32>
    %cst_20 = arith.constant 0.00999999977 : f32
    %28 = vector.broadcast %cst_20 : f32 to vector<32x16xf32>
    %29 = arith.mulf %28, %25 : vector<32x16xf32>
    %30 = arith.select %27, %25, %29 : vector<32x16xi1>, vector<32x16xf32>
    %31 = arith.truncf %30 : vector<32x16xf32> to vector<32x16xbf16>
    %32 = vector.extract_strided_slice %6 {offsets = [16, 0], sizes = [16, 16], strides = [1, 1]} : vector<64x16xbf16> to vector<16x16xbf16>
    %cst_21 = arith.constant dense<0.000000e+00> : vector<32x16xf32>
    %33 = tpu.matmul %31, %32, %cst_21 {dimension_numbers = #tpu.dot_dimension_numbers<[1], [0], [0], [1], [0, 0, 1, 1], [], []>} : vector<32x16xbf16>, vector<16x16xbf16>, vector<32x16xf32> -> vector<32x16xf32>
    %34 = arith.addf %19, %33 : vector<32x16xf32>
    %c0_22 = arith.constant 0 : index
    %c0_23 = arith.constant 0 : index
    %35 = vector.load %arg5[%c0_22, %c0_23] : memref<288x16xbf16, #tpu.memory_space<vmem>>, vector<288x16xbf16>
    %36 = vector.extract_strided_slice %35 {offsets = [128, 0], sizes = [32, 16], strides = [1, 1]} : vector<288x16xbf16> to vector<32x16xbf16>
    %cst_24 = arith.constant dense<0.000000e+00> : vector<32x16xf32>
    %37 = tpu.matmul %5, %36, %cst_24 {dimension_numbers = #tpu.dot_dimension_numbers<[1], [0], [0], [1], [0, 0, 1, 1], [], []>} : vector<32x32xbf16>, vector<32x16xbf16>, vector<32x16xf32> -> vector<32x16xf32>
    %c0_25 = arith.constant 0 : index
    %c0_26 = arith.constant 0 : index
    %38 = vector.load %arg9[%c0_25, %c0_26] : memref<1x16xf32, #tpu.memory_space<vmem>>, vector<1x16xf32>
    %39 = vector.broadcast %38 : vector<1x16xf32> to vector<32x16xf32>
    %40 = arith.addf %37, %39 : vector<32x16xf32>
    %cst_27 = arith.constant 0.000000e+00 : f32
    %41 = vector.broadcast %cst_27 : f32 to vector<32x16xf32>
    %42 = arith.cmpf ogt, %40, %41 : vector<32x16xf32>
    %cst_28 = arith.constant 0.00999999977 : f32
    %43 = vector.broadcast %cst_28 : f32 to vector<32x16xf32>
    %44 = arith.mulf %43, %40 : vector<32x16xf32>
    %45 = arith.select %42, %40, %44 : vector<32x16xi1>, vector<32x16xf32>
    %46 = arith.truncf %45 : vector<32x16xf32> to vector<32x16xbf16>
    %47 = vector.extract_strided_slice %6 {offsets = [32, 0], sizes = [16, 16], strides = [1, 1]} : vector<64x16xbf16> to vector<16x16xbf16>
    %cst_29 = arith.constant dense<0.000000e+00> : vector<32x16xf32>
    %48 = tpu.matmul %46, %47, %cst_29 {dimension_numbers = #tpu.dot_dimension_numbers<[1], [0], [0], [1], [0, 0, 1, 1], [], []>} : vector<32x16xbf16>, vector<16x16xbf16>, vector<32x16xf32> -> vector<32x16xf32>
    %49 = arith.addf %34, %48 : vector<32x16xf32>
    %c0_30 = arith.constant 0 : index
    %c0_31 = arith.constant 0 : index
    %50 = vector.load %arg6[%c0_30, %c0_31] : memref<288x16xbf16, #tpu.memory_space<vmem>>, vector<288x16xbf16>
    %51 = vector.extract_strided_slice %50 {offsets = [128, 0], sizes = [32, 16], strides = [1, 1]} : vector<288x16xbf16> to vector<32x16xbf16>
    %cst_32 = arith.constant dense<0.000000e+00> : vector<32x16xf32>
    %52 = tpu.matmul %5, %51, %cst_32 {dimension_numbers = #tpu.dot_dimension_numbers<[1], [0], [0], [1], [0, 0, 1, 1], [], []>} : vector<32x32xbf16>, vector<32x16xbf16>, vector<32x16xf32> -> vector<32x16xf32>
    %c0_33 = arith.constant 0 : index
    %c0_34 = arith.constant 0 : index
    %53 = vector.load %arg10[%c0_33, %c0_34] : memref<1x16xf32, #tpu.memory_space<vmem>>, vector<1x16xf32>
    %54 = vector.broadcast %53 : vector<1x16xf32> to vector<32x16xf32>
    %55 = arith.addf %52, %54 : vector<32x16xf32>
    %cst_35 = arith.constant 0.000000e+00 : f32
    %56 = vector.broadcast %cst_35 : f32 to vector<32x16xf32>
    %57 = arith.cmpf ogt, %55, %56 : vector<32x16xf32>
    %cst_36 = arith.constant 0.00999999977 : f32
    %58 = vector.broadcast %cst_36 : f32 to vector<32x16xf32>
    %59 = arith.mulf %58, %55 : vector<32x16xf32>
    %60 = arith.select %57, %55, %59 : vector<32x16xi1>, vector<32x16xf32>
    %61 = arith.truncf %60 : vector<32x16xf32> to vector<32x16xbf16>
    %62 = vector.extract_strided_slice %6 {offsets = [48, 0], sizes = [16, 16], strides = [1, 1]} : vector<64x16xbf16> to vector<16x16xbf16>
    %cst_37 = arith.constant dense<0.000000e+00> : vector<32x16xf32>
    %63 = tpu.matmul %61, %62, %cst_37 {dimension_numbers = #tpu.dot_dimension_numbers<[1], [0], [0], [1], [0, 0, 1, 1], [], []>} : vector<32x16xbf16>, vector<16x16xbf16>, vector<32x16xf32> -> vector<32x16xf32>
    %64 = arith.addf %49, %63 : vector<32x16xf32>
    %65 = vector.shape_cast %4 : vector<32x32xf32> to vector<2x16x32xf32>
    %cst_38 = arith.constant dense<0.000000e+00> : vector<2x32xf32>
    %66 = vector.multi_reduction <add>, %65, %cst_38 [1] : vector<2x16x32xf32> to vector<2x32xf32>
    %cst_39 = arith.constant 1.600000e+01 : f32
    %67 = vector.broadcast %cst_39 : f32 to vector<2x32xf32>
    %68 = arith.divf %66, %67 : vector<2x32xf32>
    %69 = arith.truncf %68 : vector<2x32xf32> to vector<2x32xbf16>
    %c0_40 = arith.constant 0 : index
    %c0_41 = arith.constant 0 : index
    %70 = vector.load %arg12[%c0_40, %c0_41] : memref<32x16xbf16, #tpu.memory_space<vmem>>, vector<32x16xbf16>
    %cst_42 = arith.constant dense<0.000000e+00> : vector<2x16xf32>
    %71 = tpu.matmul %69, %70, %cst_42 {dimension_numbers = #tpu.dot_dimension_numbers<[1], [0], [0], [1], [0, 0, 1, 1], [], []>} : vector<2x32xbf16>, vector<32x16xbf16>, vector<2x16xf32> -> vector<2x16xf32>
    %c0_43 = arith.constant 0 : index
    %c0_44 = arith.constant 0 : index
    %72 = vector.load %arg13[%c0_43, %c0_44] : memref<1x16xf32, #tpu.memory_space<vmem>>, vector<1x16xf32>
    %73 = vector.broadcast %72 : vector<1x16xf32> to vector<2x16xf32>
    %74 = arith.addf %71, %73 : vector<2x16xf32>
    %cst_45 = arith.constant 0.000000e+00 : f32
    %75 = vector.broadcast %cst_45 : f32 to vector<2x16xf32>
    %76 = arith.cmpf ogt, %74, %75 : vector<2x16xf32>
    %cst_46 = arith.constant 0.00999999977 : f32
    %77 = vector.broadcast %cst_46 : f32 to vector<2x16xf32>
    %78 = arith.mulf %77, %74 : vector<2x16xf32>
    %79 = arith.select %76, %74, %78 : vector<2x16xi1>, vector<2x16xf32>
    %80 = arith.truncf %79 : vector<2x16xf32> to vector<2x16xbf16>
    %c0_47 = arith.constant 0 : index
    %c0_48 = arith.constant 0 : index
    %81 = vector.load %arg14[%c0_47, %c0_48] : memref<16x16xbf16, #tpu.memory_space<vmem>>, vector<16x16xbf16>
    %cst_49 = arith.constant dense<0.000000e+00> : vector<2x16xf32>
    %82 = tpu.matmul %80, %81, %cst_49 {dimension_numbers = #tpu.dot_dimension_numbers<[1], [0], [0], [1], [0, 0, 1, 1], [], []>} : vector<2x16xbf16>, vector<16x16xbf16>, vector<2x16xf32> -> vector<2x16xf32>
    %83 = vector.shape_cast %64 : vector<32x16xf32> to vector<2x16x16xf32>
    %84 = vector.shape_cast %82 : vector<2x16xf32> to vector<2x1x16xf32>
    %85 = vector.broadcast %84 : vector<2x1x16xf32> to vector<2x16x16xf32>
    %86 = arith.addf %83, %85 : vector<2x16x16xf32>
    %c0_50 = arith.constant 0 : index
    %c0_51 = arith.constant 0 : index
    %87 = vector.load %arg15[%c0_50, %c0_51] : memref<1x16xf32, #tpu.memory_space<vmem>>, vector<1x16xf32>
    %88 = vector.shape_cast %87 : vector<1x16xf32> to vector<1x1x16xf32>
    %89 = vector.broadcast %88 : vector<1x1x16xf32> to vector<2x16x16xf32>
    %90 = arith.addf %86, %89 : vector<2x16x16xf32>
    %cst_52 = arith.constant 0.000000e+00 : f32
    %91 = vector.broadcast %cst_52 : f32 to vector<2x16x16xf32>
    %92 = arith.cmpf ogt, %90, %91 : vector<2x16x16xf32>
    %cst_53 = arith.constant 0.00999999977 : f32
    %93 = vector.broadcast %cst_53 : f32 to vector<2x16x16xf32>
    %94 = arith.mulf %93, %90 : vector<2x16x16xf32>
    %95 = arith.select %92, %90, %94 : vector<2x16x16xi1>, vector<2x16x16xf32>
    %96 = vector.shape_cast %95 : vector<2x16x16xf32> to vector<32x16xf32>
    %97 = arith.truncf %96 : vector<32x16xf32> to vector<32x16xbf16>
    %c0_54 = arith.constant 0 : index
    %c0_55 = arith.constant 0 : index
    %98 = vector.load %arg16[%c0_54, %c0_55] : memref<16x4xbf16, #tpu.memory_space<vmem>>, vector<16x4xbf16>
    %cst_56 = arith.constant dense<0.000000e+00> : vector<32x4xf32>
    %99 = tpu.matmul %97, %98, %cst_56 {dimension_numbers = #tpu.dot_dimension_numbers<[1], [0], [0], [1], [0, 0, 1, 1], [], []>} : vector<32x16xbf16>, vector<16x4xbf16>, vector<32x4xf32> -> vector<32x4xf32>
    %c0_57 = arith.constant 0 : index
    %c0_58 = arith.constant 0 : index
    %100 = vector.load %arg17[%c0_57, %c0_58] : memref<1x4xf32, #tpu.memory_space<vmem>>, vector<1x4xf32>
    %101 = vector.broadcast %100 : vector<1x4xf32> to vector<32x4xf32>
    %102 = arith.addf %99, %101 : vector<32x4xf32>
    %c0_59 = arith.constant 0 : index
    %c0_60 = arith.constant 0 : index
    %103 = vector.load %arg18[%c0_59, %c0_60] : memref<512x32xf32, #tpu.memory_space<vmem>>, vector<512x32xf32>
    %cst_61 = arith.constant dense<0.000000e+00> : vector<512x4xf32>
    %104 = tpu.matmul %103, %102, %cst_61 {dimension_numbers = #tpu.dot_dimension_numbers<[1], [0], [0], [1], [0, 0, 1, 1], [], []>} : vector<512x32xf32>, vector<32x4xf32>, vector<512x4xf32> -> vector<512x4xf32>
    %c0_62 = arith.constant 0 : index
    %c0_63 = arith.constant 0 : index
    %105 = vector.load %arg23[%c0_62, %c0_63] : memref<512x4xf32, #tpu.memory_space<vmem>>, vector<512x4xf32>
    tpu.vector_store %arg23[%c0_62, %c0_63], %104 {strides = array<i32>} : memref<512x4xf32, #tpu.memory_space<vmem>>, vector<512x4xf32>,
    %c0_64 = arith.constant 0 : index
    %c0_65 = arith.constant 0 : index
    %106 = vector.load %arg19[%c0_64, %c0_65] : memref<32x8xbf16, #tpu.memory_space<vmem>>, vector<32x8xbf16>
    %cst_66 = arith.constant dense<0.000000e+00> : vector<2x8xf32>
    %107 = tpu.matmul %69, %106, %cst_66 {dimension_numbers = #tpu.dot_dimension_numbers<[1], [0], [0], [1], [0, 0, 1, 1], [], []>} : vector<2x32xbf16>, vector<32x8xbf16>, vector<2x8xf32> -> vector<2x8xf32>
    %c0_67 = arith.constant 0 : index
    %c0_68 = arith.constant 0 : index
    %108 = vector.load %arg20[%c0_67, %c0_68] : memref<1x8xf32, #tpu.memory_space<vmem>>, vector<1x8xf32>
    %109 = vector.broadcast %108 : vector<1x8xf32> to vector<2x8xf32>
    %110 = arith.addf %107, %109 : vector<2x8xf32>
    %cst_69 = arith.constant 0.000000e+00 : f32
    %111 = vector.broadcast %cst_69 : f32 to vector<2x8xf32>
    %112 = arith.maximumf %110, %111 : vector<2x8xf32>
    %c0_70 = arith.constant 0 : index
    %c0_71 = arith.constant 0 : index
    %113 = vector.load %arg21[%c0_70, %c0_71] : memref<1x8xf32, #tpu.memory_space<vmem>>, vector<1x8xf32>
    %114 = vector.broadcast %113 : vector<1x8xf32> to vector<2x8xf32>
    %115 = arith.mulf %112, %114 : vector<2x8xf32>
    %cst_72 = arith.constant dense<0.000000e+00> : vector<2xf32>
    %116 = vector.multi_reduction <add>, %115, %cst_72 [1] : vector<2x8xf32> to vector<2xf32>
    %117 = vector.shape_cast %116 : vector<2xf32> to vector<2x1xf32>
    %c0_73 = arith.constant 0 : index
    %c0_74 = arith.constant 0 : index
    %118 = vector.load %arg22[%c0_73, %c0_74] : memref<1x1xf32, #tpu.memory_space<vmem>>, vector<1x1xf32>
    %119 = vector.broadcast %118 : vector<1x1xf32> to vector<2x1xf32>
    %120 = arith.addf %117, %119 : vector<2x1xf32>
    %c0_75 = arith.constant 0 : index
    %c0_76 = arith.constant 0 : index
    %121 = vector.load %arg24[%c0_75, %c0_76] : memref<2x1xf32, #tpu.memory_space<vmem>>, vector<2x1xf32>
    tpu.vector_store %arg24[%c0_75, %c0_76], %120 {strides = array<i32>} : memref<2x1xf32, #tpu.memory_space<vmem>>, vector<2x1xf32>,
    return
  }
  func.func @transform_0(%arg0: i32) -> (i32, i32) {
    %c0_i32 = arith.constant 0 : i32
    %c0_i32_0 = arith.constant 0 : i32
    %c0_i32_1 = arith.constant 0 : i32
    return %c0_i32, %c0_i32_0 : i32, i32
  }
  func.func @transform_1(%arg0: i32) -> (i32, i32) {
    %c0_i32 = arith.constant 0 : i32
    %c0_i32_0 = arith.constant 0 : i32
    %c0_i32_1 = arith.constant 0 : i32
    return %c0_i32, %c0_i32_0 : i32, i32
  }
  func.func @transform_2(%arg0: i32) -> (i32, i32) {
    %c0_i32 = arith.constant 0 : i32
    %c0_i32_0 = arith.constant 0 : i32
    %c0_i32_1 = arith.constant 0 : i32
    return %c0_i32, %c0_i32_0 : i32, i32
  }
  func.func @transform_3(%arg0: i32) -> (i32, i32) {
    %c0_i32 = arith.constant 0 : i32
    %c0_i32_0 = arith.constant 0 : i32
    %c0_i32_1 = arith.constant 0 : i32
    return %c0_i32, %c0_i32_0 : i32, i32
  }
  func.func @transform_4(%arg0: i32) -> (i32, i32) {
    %c0_i32 = arith.constant 0 : i32
    %c0_i32_0 = arith.constant 0 : i32
    %c0_i32_1 = arith.constant 0 : i32
    return %c0_i32, %c0_i32_0 : i32, i32
  }
  func.func @transform_5(%arg0: i32) -> (i32, i32) {
    %c0_i32 = arith.constant 0 : i32
    %c0_i32_0 = arith.constant 0 : i32
    %c0_i32_1 = arith.constant 0 : i32
    return %c0_i32, %c0_i32_0 : i32, i32
  }
  func.func @transform_6(%arg0: i32) -> (i32, i32) {
    %c0_i32 = arith.constant 0 : i32
    %c0_i32_0 = arith.constant 0 : i32
    %c0_i32_1 = arith.constant 0 : i32
    return %c0_i32, %c0_i32_0 : i32, i32
  }
  func.func @transform_7(%arg0: i32) -> (i32, i32) {
    %c0_i32 = arith.constant 0 : i32
    %c0_i32_0 = arith.constant 0 : i32
    %c0_i32_1 = arith.constant 0 : i32
    return %c0_i32, %c0_i32_0 : i32, i32
  }
  func.func @transform_8(%arg0: i32) -> (i32, i32) {
    %c0_i32 = arith.constant 0 : i32
    %c0_i32_0 = arith.constant 0 : i32
    %c0_i32_1 = arith.constant 0 : i32
    return %c0_i32, %c0_i32_0 : i32, i32
  }
  func.func @transform_9(%arg0: i32) -> (i32, i32) {
    %c0_i32 = arith.constant 0 : i32
    %c0_i32_0 = arith.constant 0 : i32
    %c0_i32_1 = arith.constant 0 : i32
    return %c0_i32, %c0_i32_0 : i32, i32
  }
  func.func @transform_10(%arg0: i32) -> (i32, i32) {
    %c0_i32 = arith.constant 0 : i32
    %c0_i32_0 = arith.constant 0 : i32
    %c0_i32_1 = arith.constant 0 : i32
    return %c0_i32, %c0_i32_0 : i32, i32
  }
  func.func @transform_11(%arg0: i32) -> (i32, i32) {
    %c0_i32 = arith.constant 0 : i32
    %c0_i32_0 = arith.constant 0 : i32
    %c0_i32_1 = arith.constant 0 : i32
    return %c0_i32, %c0_i32_0 : i32, i32
  }
  func.func @transform_12(%arg0: i32) -> (i32, i32) {
    %c0_i32 = arith.constant 0 : i32
    %c0_i32_0 = arith.constant 0 : i32
    %c0_i32_1 = arith.constant 0 : i32
    return %c0_i32, %c0_i32_0 : i32, i32
  }
  func.func @transform_13(%arg0: i32) -> (i32, i32) {
    %c0_i32 = arith.constant 0 : i32
    %c0_i32_0 = arith.constant 0 : i32
    %c0_i32_1 = arith.constant 0 : i32
    return %c0_i32, %c0_i32_0 : i32, i32
  }
  func.func @transform_14(%arg0: i32) -> (i32, i32) {
    %c0_i32 = arith.constant 0 : i32
    %c0_i32_0 = arith.constant 0 : i32
    %c0_i32_1 = arith.constant 0 : i32
    return %c0_i32, %c0_i32_0 : i32, i32
  }
  func.func @transform_15(%arg0: i32) -> (i32, i32) {
    %c0_i32 = arith.constant 0 : i32
    %c0_i32_0 = arith.constant 0 : i32
    %c0_i32_1 = arith.constant 0 : i32
    return %c0_i32, %c0_i32_0 : i32, i32
  }
  func.func @transform_16(%arg0: i32) -> (i32, i32) {
    %c0_i32 = arith.constant 0 : i32
    %c0_i32_0 = arith.constant 0 : i32
    %c0_i32_1 = arith.constant 0 : i32
    return %c0_i32, %c0_i32_0 : i32, i32
  }
  func.func @transform_17(%arg0: i32) -> (i32, i32) {
    %c0_i32 = arith.constant 0 : i32
    %c0_i32_0 = arith.constant 0 : i32
    %c0_i32_1 = arith.constant 0 : i32
    return %c0_i32, %c0_i32_0 : i32, i32
  }
  func.func @transform_18(%arg0: i32) -> (i32, i32) {
    %c0_i32 = arith.constant 0 : i32
    %c0_i32_0 = arith.constant 0 : i32
    %c0_i32_1 = arith.constant 0 : i32
    return %c0_i32, %c0_i32_0 : i32, i32
  }
  func.func @transform_19(%arg0: i32) -> (i32, i32) {
    %c0_i32 = arith.constant 0 : i32
    %c0_i32_0 = arith.constant 0 : i32
    %c0_i32_1 = arith.constant 0 : i32
    return %c0_i32, %c0_i32_0 : i32, i32
  }
  func.func @transform_20(%arg0: i32) -> (i32, i32) {
    %c0_i32 = arith.constant 0 : i32
    %c0_i32_0 = arith.constant 0 : i32
    %c0_i32_1 = arith.constant 0 : i32
    return %c0_i32, %c0_i32_0 : i32, i32
  }
  func.func @transform_21(%arg0: i32) -> (i32, i32) {
    %c0_i32 = arith.constant 0 : i32
    %c0_i32_0 = arith.constant 0 : i32
    %c0_i32_1 = arith.constant 0 : i32
    return %c0_i32, %c0_i32_0 : i32, i32
  }
  func.func @transform_22(%arg0: i32) -> (i32, i32) {
    %c0_i32 = arith.constant 0 : i32
    %c0_i32_0 = arith.constant 0 : i32
    %c0_i32_1 = arith.constant 0 : i32
    return %c0_i32, %c0_i32_0 : i32, i32
  }
  func.func @transform_23(%arg0: i32) -> (i32, i32) {
    %c0_i32 = arith.constant 0 : i32
    %c0_i32_0 = arith.constant 0 : i32
    %c0_i32_1 = arith.constant 0 : i32
    return %c0_i32, %c0_i32_0 : i32, i32
  }
}

</mosaic_0001>

<bundles_post_ra>
// kernel: deeplabv3_forward.1
= control target key start
LH: loop header
LB: loop body
LE: loop exit
PB: predicated region body
PF: predicated region fallthrough
CT: control target
= control target key end

     0   :  { %vm114_vm0 = vcmask 392192   ;;  %vm174_vm1 = vcmask 261120   ;;  %v1490_v31 = vmov 16.0   ;;  %vm547_vm3 = vcmask 1041409   ;;  %s2254_s1 = inlined_call_operand.vmem [shape: bf16[48,32], index: 1, kind: input, shape index: {}]   ;;  %s2255_s0 = inlined_call_operand.vmem [shape: bf16[32,48], index: 0, kind: input, shape index: {}]   ;;  %s2256_s6 = inlined_call_operand.vmem [shape: f32[1,16], index: 6, kind: input, shape index: {}]   ;;  %s2257_s2 = inlined_call_operand.vmem [shape: bf16[32,16], index: 2, kind: input, shape index: {}]   ;;  %s2258_s3 = inlined_call_operand.vmem [shape: bf16[288,16], index: 3, kind: input, shape index: {}]   ;;  %s2259_s5 = inlined_call_operand.vmem [shape: bf16[288,16], index: 5, kind: input, shape index: {}]   ;;  %s2260_s4 = inlined_call_operand.vmem [shape: bf16[288,16], index: 4, kind: input, shape index: {}]   ;;  %s2261_s9 = inlined_call_operand.vmem [shape: f32[1,16], index: 9, kind: input, shape index: {}]   ;;  %s2262_s7 = inlined_call_operand.vmem [shape: f32[1,16], index: 7, kind: input, shape index: {}]   ;;  %s2263_s11 = inlined_call_operand.vmem [shape: bf16[32,16], index: 11, kind: input, shape index: {}]   ;;  %s2264_s8 = inlined_call_operand.vmem [shape: f32[1,16], index: 8, kind: input, shape index: {}]   ;;  %s2265_s12 = inlined_call_operand.vmem [shape: f32[1,16], index: 12, kind: input, shape index: {}]   ;;  %s2266_s10 = inlined_call_operand.vmem [shape: bf16[64,16], index: 10, kind: input, shape index: {}]   ;;  %s2267_s13 = inlined_call_operand.vmem [shape: bf16[16,16], index: 13, kind: input, shape index: {}]   ;;  %s2268_s14 = inlined_call_operand.vmem [shape: f32[1,16], index: 14, kind: input, shape index: {}]   ;;  %s2269_s16 = inlined_call_operand.vmem [shape: f32[1,4], index: 16, kind: input, shape index: {}]   ;;  %s2270_s15 = inlined_call_operand.vmem [shape: bf16[16,4], index: 15, kind: input, shape index: {}]   ;;  %s2271_s17 = inlined_call_operand.vmem [shape: f32[512,32], index: 17, kind: input, shape index: {}]   ;;  %s2272_s18 = inlined_call_operand.vmem [shape: bf16[32,8], index: 18, kind: input, shape index: {}]   ;;  %s2273_s19 = inlined_call_operand.vmem [shape: f32[1,8], index: 19, kind: input, shape index: {}]   ;;  %s2274_s22 = inlined_call_operand.vmem [shape: f32[512,4], index: 22, kind: output, shape index: {0}]   ;;  %s2275_s20 = inlined_call_operand.vmem [shape: f32[1,8], index: 20, kind: input, shape index: {}]   ;;  %s2276_s21 = inlined_call_operand.<no memory space> [shape: f32[1,1], index: 21, kind: input, shape index: {}]   ;;  %s2277_s23 = inlined_call_operand.vmem [shape: f32[2,1], index: 23, kind: output, shape index: {1}]  }
   0x1   :  { %2284 = sst [smem:[#allocation3_spill]] %s2254_s1  ;;  %v1460_v24 = vld [vmem:[%s2263_s11 + $0x8] sm:$0xff]  ;;  %v1459_v27 = vld [vmem:[%s2263_s11] sm:$0xff]  ;;  %1488 = vrcp.f32 %v1490_v31  ;;  %v1449_v62 = vld [vmem:[%s2266_s10 + $0x10] sm:$0xff]  ;;  %vm273_vm6 = vcmask 130048  }
   0x2   :  { %2285 = sst [smem:[#allocation4_spill]] %s2255_s0  ;;  %v1448_v58 = vld [vmem:[%s2266_s10 + $0x8] sm:$0xff]  ;;  %v1447_v60 = vld [vmem:[%s2266_s10] sm:$0xff] }
   0x3   :  { %2286 = sst [smem:[#allocation5_spill]] %s2256_s6  ;;  %287 = vmatpush.bf16.msra.mxu3 %v1448_v58  ;;  %v1480_v63 = vld [vmem:[%s2262_s7] ss:$0 sm:$0xff] }
   0x4   :  { %2287 = sst [smem:[#allocation6_spill]] %s2257_s2 }
   0x5   :  { %2288 = sst [smem:[#allocation7_spill]] %s2258_s3 }
   0x6   :  { %2289 = sst [smem:[#allocation8_spill]] %s2259_s5 }
   0x7   :  { %2290 = sst [smem:[#allocation9_spill]] %s2260_s4  ;;  %v1489_v34 = vpop.eup %1488  ;;  %318 = vmatpush.bf16.msrb.mxu3 %v1447_v60 }
   0x8   :  { %2291 = sst [smem:[#allocation10_spill]] %s2261_s9  ;;  %v525_v37 = vmul.f32 16.0, %v1489_v34  ;;  %vm529_vm2 = vweird.f32 %v1489_v34 }
   0x9   :  { %s2292_s24 = sld [smem:[#allocation3_spill]] }
   0xa   :  { %s2293_s27 = sld [smem:[#allocation4_spill]]  ;;  %v526_v40 = vsub.f32 1.0, %v525_v37 }
   0xb   :  { %s2294_s1 = sld [smem:[#allocation6_spill]] }
   0xc   :  { %s2295_s25 = sld [smem:[#allocation7_spill]]  ;;  %v527_v43 = vmul.f32 %v1489_v34, %v526_v40 }
   0xd   :  { %s2296_s0 = sld [smem:[#allocation8_spill]] }
   0xe   :  { %s2297_s3 = sld [smem:[#allocation9_spill]]  ;;  %v528_v46 = vadd.f32 %v1489_v34, %v527_v43 }
   0xf   :  { %v1446_v0 = vld [vmem:[%s2292_s24 + $0x10] sm:$0xff]  ;;  %v1445_v1 = vld [vmem:[%s2292_s24 + $0x8] sm:$0xff]  ;;  %v1444_v2 = vld [vmem:[%s2292_s24] sm:$0xff]  ;;  %s2298_s5 = sld [smem:[#allocation5_spill]] }
  0x10   :  { %126 = vmatpush.bf16.msra.mxu0 %v1446_v0  ;;  %v1442_v3 = vld [vmem:[%s2293_s27] sm:$0xff]  ;;  %v1443_v4 = vld [vmem:[%s2293_s27 + $0x8] sm:$0xff]  ;;  %v530_v49 = vsel %vm529_vm2, %v1489_v34, %v528_v46  ;;  %s2299_s4 = sld [smem:[#allocation10_spill]] }
  0x11   :  { %v1452_v5 = vld [vmem:[%s2294_s1 + $0x8] sm:$0xff]  ;;  %v1451_v8 = vld [vmem:[%s2294_s1] sm:$0xff] }
  0x12   :  { %v1454_v6 = vld [vmem:[%s2295_s25 + $0x48] sm:$0xff]  ;;  %187 = vmatpush.bf16.msra.mxu1 %v1452_v5  ;;  %v1453_v9 = vld [vmem:[%s2295_s25 + $0x40] sm:$0xff] }
  0x13   :  { %v1458_v7 = vld [vmem:[%s2296_s0 + $0x48] sm:$0xff]  ;;  %240 = vmatpush.bf16.msra.mxu2 %v1454_v6  ;;  %v1457_v10 = vld [vmem:[%s2296_s0 + $0x40] sm:$0xff] }
  0x14   :  { %127 = vmatpush.bf16.msra.mxu0 %v1445_v1  ;;  %v1456_v12 = vld [vmem:[%s2297_s3 + $0x48] sm:$0xff]  ;;  %v1455_v16 = vld [vmem:[%s2297_s3 + $0x40] sm:$0xff] }
  0x16   :  { %188 = vmatpush.bf16.msra.mxu1 %v1451_v8 }
  0x17   :  { %241 = vmatpush.bf16.msra.mxu2 %v1453_v9 }
  0x18   :  { %128 = vmatpush.bf16.msra.mxu0 %v1444_v2 }
  0x1a   :  { %356 = vmatpush.bf16.msrb.mxu1 %v1456_v12 }
  0x1b   :  { %1283 = vmatmul.msk.bf16.vlgmr.msra.gmra.mxu0 %vm114_vm0, %v1442_v3  ;;  %402 = vmatpush.bf16.msrb.mxu2 %v1449_v62  ;;  %v1479_v62 = vld [vmem:[%s2299_s4] ss:$0 sm:$0xff] }
  0x1c   :  { %444 = vmatpush.bf16.msrb.mxu0 %v1458_v7 }
  0x1e   :  { %357 = vmatpush.bf16.msrb.mxu1 %v1455_v16 }
  0x20   :  { %445 = vmatpush.bf16.msrb.mxu0 %v1457_v10 }
  0x2b   :  { %1284 = vmatmul.msk.bf16.gmra.mxu0 %vm114_vm0, %v1443_v4 }
  0x98   :  { %v130_v11 = vpop.f32.mrf.mxu0 }
  0x99   :  { %v140_v14 = vmax.f32 %v130_v11, 0.0 }
  0x9b   :  { %v506_v29 = vsel %vm174_vm1, %v140_v14, 0.0 }
  0xa0   :  { %v132_v13 = vpop.f32.mrf.mxu0 }
  0xa1   :  { %v141_v15 = vmax.f32 %v132_v13, 0.0  ;;  %v1450_v13 = vld [vmem:[%s2266_s10 + $0x18] sm:$0xff] }
  0xa3   :  { %v144_v17 = vpack.c.bf16 %v141_v15, %v140_v14  ;;  %v507_v25 = vsel %vm174_vm1, %v141_v15, 0.0 }
  0xa4   :  { %v508_v30 = vadd.f32 %v507_v25, %v506_v29  ;;  %v1478_v25 = vld [vmem:[%s2298_s5] ss:$0 sm:$0xff] }
  0xa5   :  { %1293 = vmatmul.msk.bf16.vlgmr.msra.gmra.mxu1 %vm174_vm1, %v144_v17  ;;  %1303 = vmatmul.msk.bf16.vlgmr.msra.gmra.mxu2 %vm174_vm1, %v144_v17 }
  0xa6   :  { %1341 = vmatmul.msk.bf16.vlgmr.msrb.gmra.mxu0 %vm174_vm1, %v144_v17  ;;  %571 = vmatpush.bf16.msra.mxu1 %v1460_v24  ;;  %v509_v33 = vrot.slane %v508_v30, 4  ;;  %v1461_v24 = vld [vmem:[%s2267_s13] sm:$0xff] }
  0xa7   :  { %600 = vmatpush.bf16.msra.mxu2 %v1461_v24  ;;  %v1462_v24 = vld [vmem:[%s2270_s15] sm:$0xff] }
  0xa8   :  { %v135_v18 = vpop.f32.mrf.mxu0  ;;  %v510_v36 = vadd.f32 %v509_v33, %v508_v30  ;;  %663 = vmatpush.bf16.msra.mxu0 %v1462_v24  ;;  %v712_v24 = vld [vmem:[%s2271_s17 + $0x128] sm:$0xff] }
  0xa9   :  { %v142_v20 = vmax.f32 %v135_v18, 0.0 }
  0xaa   :  { %572 = vmatpush.bf16.msra.mxu1 %v1459_v27  ;;  %v511_v39 = vrot.slane %v510_v36, 2 }
  0xab   :  { %v515_v26 = vsel %vm174_vm1, %v142_v20, 0.0 }
  0xac   :  { %v512_v42 = vadd.f32 %v511_v39, %v510_v36 }
  0xae   :  { %v513_v45 = vrot.slane %v512_v42, 1 }
  0xb0   :  { %v137_v19 = vpop.f32.mrf.mxu0  ;;  %v514_v48 = vadd.f32 %v513_v45, %v512_v42 }
  0xb1   :  { %v143_v21 = vmax.f32 %v137_v19, 0.0  ;;  %v1481_v19 = vld [vmem:[%s2264_s8] ss:$0 sm:$0xff] }
  0xb2   :  { %v531_v51 = vmul.f32 %v530_v49, %v514_v48 }
  0xb3   :  { %v145_v22 = vpack.c.bf16 %v143_v21, %v142_v20  ;;  %v516_v23 = vsel %vm174_vm1, %v143_v21, 0.0 }
  0xb4   :  { %v517_v28 = vadd.f32 %v516_v23, %v515_v26  ;;  %v533_v53 = vpack.c.bf16 %v531_v51, %v531_v51 }
  0xb5   :  { %1294 = vmatmul.msk.bf16.gmra.mxu1 %vm174_vm1, %v145_v22  ;;  %1304 = vmatmul.msk.bf16.gmra.mxu2 %vm174_vm1, %v145_v22 }
  0xb6   :  { %1342 = vmatmul.msk.bf16.gmra.mxu0 %vm174_vm1, %v145_v22  ;;  %v518_v32 = vrot.slane %v517_v28, 4  ;;  %v545_v55 = vunpack.c.l.b16 %v533_v53 }
  0xb8   :  { %v519_v35 = vadd.f32 %v518_v32, %v517_v28 }
  0xba   :  { %v520_v38 = vrot.slane %v519_v35, 2 }
  0xbc   :  { %v521_v41 = vadd.f32 %v520_v38, %v519_v35 }
  0xbe   :  { %v522_v44 = vrot.slane %v521_v41, 1 }
  0xc0   :  { %v523_v47 = vadd.f32 %v522_v44, %v521_v41 }
  0xc2   :  { %v532_v50 = vmul.f32 %v530_v49, %v523_v47 }
  0xc4   :  { %v534_v52 = vpack.c.bf16 %v532_v50, %v532_v50 }
  0xc5   :  { %1325 = vmatmul.msk.bf16.vlgmr.msrb.gmra.mxu1 %vm174_vm1, %v144_v17 }
  0xc6   :  { %v546_v54 = vunpack.c.l.b16 %v534_v52 }
  0xc8   :  { %v548_v56 = vsel %vm547_vm3, %v546_v54, %v545_v55  ;;  %v1482_v54 = vld [vmem:[%s2265_s12] ss:$0 sm:$0xff] }
  0xc9   :  { %v1668_v57 = vpack.c.b16 %v548_v56, %v548_v56 }
  0xd5   :  { %1326 = vmatmul.msk.bf16.gmra.mxu1 %vm174_vm1, %v145_v22 }
  0xe5   :  { %1357 = vmatmul.msk.bf16.vlgmr.msra.gmra.mxu1 %vm174_vm1, %v1668_v57 }
 0x122   :  { %v190_v59 = vpop.f32.mrf.mxu1 }
 0x123   :  { %v191_v30 = vadd.f32 %v1478_v25, %v190_v59  ;;  %v447_v42 = vpop.f32.mrf.mxu0 }
 0x125   :  { %v204_v36 = vmul.f32 0.01, %v191_v30  ;;  %vm200_vm12 = vcmp.gt.f32.partialorder %v191_v30, 0.0 }
 0x127   :  { %v208_v39 = vsel %vm200_vm12, %v191_v30, %v204_v36  ;;  %vm1253_vm12 = vcmask 1024  }
 0x128   :  { %v243_v61 = vpop.f32.mrf.mxu2 }
 0x129   :  { %v244_v1 = vadd.f32 %v1480_v63, %v243_v61 }
 0x12a   :  { %v192_v0 = vpop.f32.mrf.mxu1 }
 0x12b   :  { %v257_v3 = vmul.f32 0.01, %v244_v1  ;;  %vm253_vm4 = vcmp.gt.f32.partialorder %v244_v1, 0.0  ;;  %v193_v27 = vadd.f32 %v1478_v25, %v192_v0  ;;  %v449_v58 = vpop.f32.mrf.mxu0 }
 0x12d   :  { %v261_v7 = vsel %vm253_vm4, %v244_v1, %v257_v3  ;;  %v205_v32 = vmul.f32 0.01, %v193_v27  ;;  %vm201_vm11 = vcmp.gt.f32.partialorder %v193_v27, 0.0  ;;  %v450_v1 = vadd.f32 %v1479_v62, %v449_v58 }
 0x12f   :  { %v209_v38 = vsel %vm201_vm11, %v193_v27, %v205_v32  ;;  %vm458_vm3 = vcmp.gt.f32.partialorder %v450_v1, 0.0 }
 0x130   :  { %v245_v2 = vpop.f32.mrf.mxu2  ;;  %v212_v40 = vpack.c.bf16 %v209_v38, %v208_v39 }
 0x131   :  { %v246_v4 = vadd.f32 %v1480_v63, %v245_v2  ;;  %v448_v2 = vadd.f32 %v1479_v62, %v447_v42 }
 0x132   :  { %v195_v5 = vpop.f32.mrf.mxu1 }
 0x133   :  { %vm254_vm5 = vcmp.gt.f32.partialorder %v246_v4, 0.0  ;;  %v258_v6 = vmul.f32 0.01, %v246_v4  ;;  %v196_v47 = vadd.f32 %v1478_v25, %v195_v5  ;;  %v462_v5 = vmul.f32 0.01, %v450_v1 }
 0x134   :  { %vm457_vm4 = vcmp.gt.f32.partialorder %v448_v2, 0.0 }
 0x135   :  { %v262_v8 = vsel %vm254_vm5, %v246_v4, %v258_v6  ;;  %v206_v53 = vmul.f32 0.01, %v196_v47  ;;  %vm202_vm0 = vcmp.gt.f32.partialorder %v196_v47, 0.0  ;;  %v452_v4 = vpop.f32.mrf.mxu0 }
 0x136   :  { %v265_v9 = vpack.c.bf16 %v262_v8, %v261_v7  ;;  %v461_v7 = vmul.f32 0.01, %v448_v2  ;;  %v466_v8 = vsel %vm458_vm3, %v450_v1, %v462_v5 }
 0x137   :  { %v210_v60 = vsel %vm202_vm0, %v196_v47, %v206_v53 }
 0x138   :  { %v248_v10 = vpop.f32.mrf.mxu2  ;;  %1309 = vmatmul.msk.bf16.vlgmr.msra.gmra.mxu3 %vm273_vm6, %v265_v9  ;;  %v465_v9 = vsel %vm457_vm4, %v448_v2, %v461_v7 }
 0x139   :  { %v249_v12 = vadd.f32 %v1480_v63, %v248_v10  ;;  %490 = vmatpush.bf16.msra.mxu3 %v1450_v13  ;;  %v469_v10 = vpack.c.bf16 %v466_v8, %v465_v9  ;;  %v453_v13 = vadd.f32 %v1479_v62, %v452_v4 }
 0x13a   :  { %v197_v11 = vpop.f32.mrf.mxu1 }
 0x13b   :  { %v259_v15 = vmul.f32 0.01, %v249_v12  ;;  %vm255_vm7 = vcmp.gt.f32.partialorder %v249_v12, 0.0  ;;  %v198_v44 = vadd.f32 %v1478_v25, %v197_v11 }
 0x13d   :  { %v263_v20 = vsel %vm255_vm7, %v249_v12, %v259_v15  ;;  %v207_v49 = vmul.f32 0.01, %v198_v44  ;;  %vm203_vm15 = vcmp.gt.f32.partialorder %v198_v44, 0.0  ;;  %v454_v11 = vpop.f32.mrf.mxu0  ;;  %v463_v15 = vmul.f32 0.01, %v453_v13 }
 0x13e   :  { %v455_v12 = vadd.f32 %v1479_v62, %v454_v11  ;;  %vm459_vm7 = vcmp.gt.f32.partialorder %v453_v13, 0.0 }
 0x13f   :  { %v211_v56 = vsel %vm203_vm15, %v198_v44, %v207_v49 }
 0x140   :  { %v250_v14 = vpop.f32.mrf.mxu2  ;;  %v213_v61 = vpack.c.bf16 %v211_v56, %v210_v60  ;;  %vm460_vm5 = vcmp.gt.f32.partialorder %v455_v12, 0.0 }
 0x141   :  { %v251_v16 = vadd.f32 %v1480_v63, %v250_v14  ;;  %v464_v14 = vmul.f32 0.01, %v455_v12 }
 0x142   :  { %v359_v17 = vpop.f32.mrf.mxu1 }
 0x143   :  { %vm256_vm8 = vcmp.gt.f32.partialorder %v251_v16, 0.0  ;;  %v260_v18 = vmul.f32 0.01, %v251_v16  ;;  %v360_v23 = vadd.f32 %v1481_v19, %v359_v17  ;;  %v467_v17 = vsel %vm459_vm7, %v453_v13, %v463_v15 }
 0x145   :  { %v264_v21 = vsel %vm256_vm8, %v251_v16, %v260_v18  ;;  %v373_v28 = vmul.f32 0.01, %v360_v23  ;;  %vm369_vm9 = vcmp.gt.f32.partialorder %v360_v23, 0.0  ;;  %v468_v16 = vsel %vm460_vm5, %v455_v12, %v464_v14  ;;  %v1484_v12 = vld [vmem:[%s2269_s16] ss:$0 sm:$0xff] }
 0x146   :  { %v266_v22 = vpack.c.bf16 %v264_v21, %v263_v20  ;;  %v470_v18 = vpack.c.bf16 %v468_v16, %v467_v17 }
 0x147   :  { %v377_v33 = vsel %vm369_vm9, %v360_v23, %v373_v28 }
 0x148   :  { %1310 = vmatmul.msk.bf16.gmra.mxu3 %vm273_vm6, %v266_v22 }
 0x14a   :  { %v361_v26 = vpop.f32.mrf.mxu1 }
 0x14b   :  { %v362_v29 = vadd.f32 %v1481_v19, %v361_v26 }
 0x14d   :  { %vm370_vm10 = vcmp.gt.f32.partialorder %v362_v29, 0.0  ;;  %v374_v31 = vmul.f32 0.01, %v362_v29 }
 0x14f   :  { %v378_v34 = vsel %vm370_vm10, %v362_v29, %v374_v31 }
 0x150   :  { %v381_v35 = vpack.c.bf16 %v378_v34, %v377_v33 }
 0x152   :  { %v364_v37 = vpop.f32.mrf.mxu1  ;;  %1331 = vmatmul.msk.bf16.vlgmr.msrb.gmra.mxu2 %vm273_vm6, %v381_v35 }
 0x153   :  { %v365_v41 = vadd.f32 %v1481_v19, %v364_v37 }
 0x155   :  { %v375_v45 = vmul.f32 0.01, %v365_v41  ;;  %vm371_vm13 = vcmp.gt.f32.partialorder %v365_v41, 0.0 }
 0x157   :  { %v379_v50 = vsel %vm371_vm13, %v365_v41, %v375_v45  ;;  %v1483_v41 = vld [vmem:[%s2268_s14] ss:$0 sm:$0xff] }
 0x158   :  { %1315 = vmatmul.msk.bf16.vlgmr.msrb.gmra.mxu3 %vm273_vm6, %v212_v40 }
 0x15a   :  { %v366_v43 = vpop.f32.mrf.mxu1 }
 0x15b   :  { %v367_v46 = vadd.f32 %v1481_v19, %v366_v43 }
 0x15d   :  { %vm372_vm14 = vcmp.gt.f32.partialorder %v367_v46, 0.0  ;;  %v376_v48 = vmul.f32 0.01, %v367_v46 }
 0x15f   :  { %v380_v51 = vsel %vm372_vm14, %v367_v46, %v376_v48 }
 0x160   :  { %v382_v52 = vpack.c.bf16 %v380_v51, %v379_v50 }
 0x162   :  { %1332 = vmatmul.msk.bf16.gmra.mxu2 %vm273_vm6, %v382_v52  ;;  %v574_v55 = vpop.f32.mrf.mxu1 }
 0x163   :  { %v575_v59 = vadd.f32 %v1482_v54, %v574_v55 }
 0x165   :  { %v579_v63 = vmul.f32 0.01, %v575_v59  ;;  %vm578_vm2 = vcmp.gt.f32.partialorder %v575_v59, 0.0 }
 0x167   :  { %v580_v3 = vsel %vm578_vm2, %v575_v59, %v579_v63 }
 0x168   :  { %1316 = vmatmul.msk.bf16.gmra.mxu3 %vm273_vm6, %v213_v61  ;;  %v581_v6 = vpack.c.bf16 %v580_v3, %v580_v3 }
 0x16a   :  { %v576_v0 = vpop.f32.mrf.mxu1 }
 0x172   :  { %1362 = vmatmul.msk.bf16.vlgmr.msra.gmra.mxu2 %vm273_vm6, %v581_v6 }
 0x178   :  { %1347 = vmatmul.msk.bf16.vlgmr.msra.gmra.mxu3 %vm273_vm6, %v469_v10 }
 0x188   :  { %1348 = vmatmul.msk.bf16.gmra.mxu3 %vm273_vm6, %v470_v18  ;;  %v707_v18 = vld [vmem:[%s2271_s17 + $0x100] sm:$0xff] }
 0x1bb   :  { %v289_v19 = vpop.f32.mrf.mxu3 }
 0x1c3   :  { %v291_v20 = vpop.f32.mrf.mxu3 }
 0x1cb   :  { %v294_v21 = vpop.f32.mrf.mxu3 }
 0x1d3   :  { %v296_v22 = vpop.f32.mrf.mxu3 }
 0x1d5   :  { %v404_v23 = vpop.f32.mrf.mxu2 }
 0x1db   :  { %v320_v25 = vpop.f32.mrf.mxu3 }
 0x1dc   :  { %v321_v33 = vadd.f32 %v320_v25, %v289_v19  ;;  %v1464_v19 = vld [vmem:[%s2272_s18 + $0x8] sm:$0xff]  ;;  %v1463_v25 = vld [vmem:[%s2272_s18] sm:$0xff] }
 0x1dd   :  { %v406_v26 = vpop.f32.mrf.mxu2 }
 0x1de   :  { %v414_v34 = vadd.f32 %v404_v23, %v321_v33  ;;  %v711_v23 = vld [vmem:[%s2271_s17 + $0x120] sm:$0xff] }
 0x1df   :  { %v719_v33 = vld [vmem:[%s2271_s17 + $0x160] sm:$0xff] }
 0x1e3   :  { %v322_v27 = vpop.f32.mrf.mxu3 }
 0x1e4   :  { %v323_v38 = vadd.f32 %v322_v27, %v291_v20  ;;  %v708_v20 = vld [vmem:[%s2271_s17 + $0x108] sm:$0xff]  ;;  %v714_v27 = vld [vmem:[%s2271_s17 + $0x138] sm:$0xff] }
 0x1e5   :  { %v409_v28 = vpop.f32.mrf.mxu2 }
 0x1e6   :  { %v415_v42 = vadd.f32 %v406_v26, %v323_v38  ;;  %v713_v26 = vld [vmem:[%s2271_s17 + $0x130] sm:$0xff]  ;;  %v724_v38 = vld [vmem:[%s2271_s17 + $0x188] sm:$0xff] }
 0x1eb   :  { %v325_v29 = vpop.f32.mrf.mxu3 }
 0x1ec   :  { %v326_v46 = vadd.f32 %v325_v29, %v294_v21  ;;  %v709_v21 = vld [vmem:[%s2271_s17 + $0x110] sm:$0xff]  ;;  %v716_v29 = vld [vmem:[%s2271_s17 + $0x148] sm:$0xff] }
 0x1ed   :  { %v411_v30 = vpop.f32.mrf.mxu2 }
 0x1ee   :  { %v416_v52 = vadd.f32 %v409_v28, %v326_v46  ;;  %v715_v28 = vld [vmem:[%s2271_s17 + $0x140] sm:$0xff]  ;;  %v676_v46 = vld [vmem:[%s2271_s17 + $0x8] sm:$0xff] }
 0x1f3   :  { %v327_v31 = vpop.f32.mrf.mxu3 }
 0x1f4   :  { %v328_v59 = vadd.f32 %v327_v31, %v296_v22  ;;  %v710_v22 = vld [vmem:[%s2271_s17 + $0x118] sm:$0xff] }
 0x1f5   :  { %v602_v32 = vpop.f32.mrf.mxu2  ;;  %v718_v31 = vld [vmem:[%s2271_s17 + $0x158] sm:$0xff] }
 0x1f6   :  { %v608_v39 = vperm.slane %v602_v32, 0  ;;  %v607_v50 = vrot.slane %v602_v32, 1  ;;  %v417_v62 = vadd.f32 %v411_v30, %v328_v59  ;;  %v717_v30 = vld [vmem:[%s2271_s17 + $0x150] sm:$0xff] }
 0x1f7   :  { %v689_v32 = vld [vmem:[%s2271_s17 + $0x70] sm:$0xff] }
 0x1f8   :  { %v609_v60 = vperm.slane %v607_v50, 0  ;;  %v695_v50 = vld [vmem:[%s2271_s17 + $0xa0] sm:$0xff]  ;;  %v697_v59 = vld [vmem:[%s2271_s17 + $0xb0] sm:$0xff] }
 0x1fb   :  { %v492_v35 = vpop.f32.mrf.mxu3 }
 0x1fc   :  { %v502_v36 = vadd.f32 %v492_v35, %v414_v34  ;;  %v690_v34 = vld [vmem:[%s2271_s17 + $0x78] sm:$0xff]  ;;  %v723_v35 = vld [vmem:[%s2271_s17 + $0x180] sm:$0xff] }
 0x1fd   :  { %v604_v37 = vpop.f32.mrf.mxu2 }
 0x1fe   :  { %v612_v40 = vadd.f32 %v608_v39, %v502_v36  ;;  %v720_v36 = vld [vmem:[%s2271_s17 + $0x168] sm:$0xff]  ;;  %v691_v37 = vld [vmem:[%s2271_s17 + $0x80] sm:$0xff] }
 0x200   :  { %v620_v44 = vadd.f32 %v1483_v41, %v612_v40  ;;  %v692_v40 = vld [vmem:[%s2271_s17 + $0x88] sm:$0xff] }
 0x202   :  { %v628_v48 = vmul.f32 0.01, %v620_v44  ;;  %vm624_vm8 = vcmp.gt.f32.partialorder %v620_v44, 0.0 }
 0x203   :  { %v494_v43 = vpop.f32.mrf.mxu3 }
 0x204   :  { %v503_v45 = vadd.f32 %v494_v43, %v415_v42  ;;  %v632_v54 = vsel %vm624_vm8, %v620_v44, %v628_v48  ;;  %v722_v42 = vld [vmem:[%s2271_s17 + $0x178] sm:$0xff]  ;;  %v675_v43 = vld [vmem:[%s2271_s17] sm:$0xff]  ;;  %v693_v44 = vld [vmem:[%s2271_s17 + $0x90] sm:$0xff] }
 0x206   :  { %v613_v47 = vadd.f32 %v608_v39, %v503_v45  ;;  %v721_v39 = vld [vmem:[%s2271_s17 + $0x170] sm:$0xff]  ;;  %v726_v45 = vld [vmem:[%s2271_s17 + $0x198] sm:$0xff] }
 0x208   :  { %v621_v49 = vadd.f32 %v1483_v41, %v613_v47  ;;  %v694_v47 = vld [vmem:[%s2271_s17 + $0x98] sm:$0xff] }
 0x20a   :  { %vm625_vm9 = vcmp.gt.f32.partialorder %v621_v49, 0.0  ;;  %v629_v51 = vmul.f32 0.01, %v621_v49 }
 0x20b   :  { %v497_v53 = vpop.f32.mrf.mxu3 }
 0x20c   :  { %v633_v55 = vsel %vm625_vm9, %v621_v49, %v629_v51  ;;  %v504_v56 = vadd.f32 %v497_v53, %v416_v52  ;;  %v677_v49 = vld [vmem:[%s2271_s17 + $0x10] sm:$0xff]  ;;  %v728_v52 = vld [vmem:[%s2271_s17 + $0x1a8] sm:$0xff]  ;;  %v678_v53 = vld [vmem:[%s2271_s17 + $0x18] sm:$0xff] }
 0x20d   :  { %v636_v58 = vpack.c.bf16 %v633_v55, %v632_v54  ;;  %v696_v54 = vld [vmem:[%s2271_s17 + $0xa8] sm:$0xff] }
 0x20e   :  { %v614_v61 = vadd.f32 %v609_v60, %v504_v56  ;;  %v729_v56 = vld [vmem:[%s2271_s17 + $0x1b0] sm:$0xff] }
 0x20f   :  { %1367 = vmatmul.msk.bf16.vlgmr.msra.gmra.mxu0 %vm273_vm6, %v636_v58  ;;  %v679_v58 = vld [vmem:[%s2271_s17 + $0x20] sm:$0xff] }
 0x210   :  { %v622_v0 = vadd.f32 %v1483_v41, %v614_v61  ;;  %v730_v61 = vld [vmem:[%s2271_s17 + $0x1b8] sm:$0xff] }
 0x212   :  { %v630_v3 = vmul.f32 0.01, %v622_v0  ;;  %vm626_vm10 = vcmp.gt.f32.partialorder %v622_v0, 0.0 }
 0x213   :  { %v499_v63 = vpop.f32.mrf.mxu3 }
 0x214   :  { %v505_v1 = vadd.f32 %v499_v63, %v417_v62  ;;  %v634_v6 = vsel %vm626_vm10, %v622_v0, %v630_v3  ;;  %v680_v62 = vld [vmem:[%s2271_s17 + $0x28] sm:$0xff]  ;;  %v698_v63 = vld [vmem:[%s2271_s17 + $0xb8] sm:$0xff]  ;;  %v699_v3 = vld [vmem:[%s2271_s17 + $0xc0] sm:$0xff] }
 0x216   :  { %v615_v2 = vadd.f32 %v609_v60, %v505_v1  ;;  %v731_v1 = vld [vmem:[%s2271_s17 + $0x1c0] sm:$0xff] }
 0x218   :  { %v623_v4 = vadd.f32 %v1483_v41, %v615_v2  ;;  %v725_v41 = vld [vmem:[%s2271_s17 + $0x190] sm:$0xff] }
 0x219   :  { %v681_v2 = vld [vmem:[%s2271_s17 + $0x30] sm:$0xff] }
 0x21a   :  { %v631_v5 = vmul.f32 0.01, %v623_v4  ;;  %vm627_vm11 = vcmp.gt.f32.partialorder %v623_v4, 0.0 }
 0x21c   :  { %v635_v7 = vsel %vm627_vm11, %v623_v4, %v631_v5  ;;  %v732_v5 = vld [vmem:[%s2271_s17 + $0x1c8] sm:$0xff] }
 0x21d   :  { %v637_v8 = vpack.c.bf16 %v635_v7, %v634_v6  ;;  %v682_v6 = vld [vmem:[%s2271_s17 + $0x38] sm:$0xff]  ;;  %v700_v7 = vld [vmem:[%s2271_s17 + $0xc8] sm:$0xff] }
 0x21f   :  { %1368 = vmatmul.msk.bf16.gmra.mxu0 %vm273_vm6, %v637_v8  ;;  %vm1140_vm6 = vcmask 31744  }
 0x28c   :  { %v665_v9 = vpop.f32.mrf.mxu0 }
 0x28d   :  { %v666_v17 = vadd.f32 %v1484_v12, %v665_v9  ;;  %v733_v9 = vld [vmem:[%s2271_s17 + $0x1d0] sm:$0xff] }
 0x294   :  { %v667_v10 = vpop.f32.mrf.mxu0 }
 0x295   :  { %v668_v16 = vadd.f32 %v1484_v12, %v667_v10  ;;  %v683_v10 = vld [vmem:[%s2271_s17 + $0x40] sm:$0xff] }
 0x29c   :  { %v670_v11 = vpop.f32.mrf.mxu0 }
 0x29d   :  { %v671_v15 = vadd.f32 %v1484_v12, %v670_v11  ;;  %v701_v11 = vld [vmem:[%s2271_s17 + $0xd0] sm:$0xff] }
 0x2a4   :  { %v672_v13 = vpop.f32.mrf.mxu0 }
 0x2a5   :  { %v673_v14 = vadd.f32 %v1484_v12, %v672_v13  ;;  %v734_v13 = vld [vmem:[%s2271_s17 + $0x1d8] sm:$0xff] }
 0x2a7   :  { %943 = vmatpush.msrb.mxu0 %v673_v14  ;;  %1465 = vmatpush.msrb.mxu1 %v673_v14 }
 0x2a8   :  { %1466 = vmatpush.msrb.mxu2 %v673_v14  ;;  %1467 = vmatpush.msrb.mxu3 %v673_v14  ;;  %v684_v14 = vld [vmem:[%s2271_s17 + $0x48] sm:$0xff] }
 0x2a9   :  { %944 = vmatpush.msrb.mxu0 %v671_v15  ;;  %1468 = vmatpush.msrb.mxu1 %v671_v15 }
 0x2aa   :  { %1469 = vmatpush.msrb.mxu2 %v671_v15  ;;  %1470 = vmatpush.msrb.mxu3 %v671_v15  ;;  %v702_v15 = vld [vmem:[%s2271_s17 + $0xd8] sm:$0xff] }
 0x2ab   :  { %945 = vmatpush.msrb.mxu0 %v668_v16  ;;  %1471 = vmatpush.msrb.mxu1 %v668_v16 }
 0x2ac   :  { %1472 = vmatpush.msrb.mxu2 %v668_v16  ;;  %1473 = vmatpush.msrb.mxu3 %v668_v16 }
 0x2ad   :  { %946 = vmatpush.msrb.mxu0 %v666_v17  ;;  %1474 = vmatpush.msrb.mxu1 %v666_v17 }
 0x2ae   :  { %1475 = vmatpush.msrb.mxu2 %v666_v17  ;;  %1476 = vmatpush.msrb.mxu3 %v666_v17  ;;  %v735_v17 = vld [vmem:[%s2271_s17 + $0x1e0] sm:$0xff] }
 0x2af   :  { %1401 = vmatmul.msk.f32.vlgmr.msrb.gmra.mxu2 %vm174_vm1, %v707_v18  ;;  %1383 = vmatmul.msk.f32.vlgmr.msrb.gmra.mxu1 %vm174_vm1, %v689_v32  ;;  %v685_v18 = vld [vmem:[%s2271_s17 + $0x50] sm:$0xff]  ;;  %v688_v32 = vld [vmem:[%s2271_s17 + $0x68] sm:$0xff] }
 0x2b0   :  { %1231 = vmatpush.bf16.msra.mxu2 %v1464_v19  ;;  %1417 = vmatmul.msk.f32.vlgmr.msrb.gmra.mxu3 %vm174_vm1, %v723_v35  ;;  %v703_v19 = vld [vmem:[%s2271_s17 + $0xe0] sm:$0xff] }
 0x2b1   :  { %1369 = vmatmul.msk.f32.vlgmr.msrb.gmra.mxu0 %vm174_vm1, %v675_v43 }
 0x2b4   :  { %1232 = vmatpush.bf16.msra.mxu2 %v1463_v25  ;;  %v737_v25 = vld [vmem:[%s2271_s17 + $0x1f0] sm:$0xff] }
 0x2b7   :  { %1402 = vmatmul.msk.f32.gmra.mxu2 %vm174_vm1, %v708_v20  ;;  %1384 = vmatmul.msk.f32.gmra.mxu1 %vm174_vm1, %v690_v34 }
 0x2b8   :  { %1418 = vmatmul.msk.f32.gmra.mxu3 %vm174_vm1, %v724_v38 }
 0x2b9   :  { %1370 = vmatmul.msk.f32.gmra.mxu0 %vm174_vm1, %v676_v46 }
 0x2bf   :  { %1403 = vmatmul.msk.f32.gmra.mxu2 %vm174_vm1, %v709_v21  ;;  %1385 = vmatmul.msk.f32.gmra.mxu1 %vm174_vm1, %v691_v37  ;;  %v736_v21 = vld [vmem:[%s2271_s17 + $0x1e8] sm:$0xff] }
 0x2c0   :  { %1419 = vmatmul.msk.f32.gmra.mxu3 %vm174_vm1, %v725_v41 }
 0x2c1   :  { %1371 = vmatmul.msk.f32.gmra.mxu0 %vm174_vm1, %v677_v49 }
 0x2c7   :  { %1404 = vmatmul.msk.f32.gmra.mxu2 %vm174_vm1, %v710_v22  ;;  %1386 = vmatmul.msk.f32.gmra.mxu1 %vm174_vm1, %v692_v40  ;;  %v686_v22 = vld [vmem:[%s2271_s17 + $0x58] sm:$0xff] }
 0x2c8   :  { %1420 = vmatmul.msk.f32.gmra.mxu3 %vm174_vm1, %v726_v45  ;;  %v1485_v45 = vld [vmem:[%s2273_s19] ss:$0 sm:$0xff] }
 0x2c9   :  { %1372 = vmatmul.msk.f32.gmra.mxu0 %vm174_vm1, %v678_v53 }
 0x2cf   :  { %1405 = vmatmul.msk.f32.gmra.mxu2 %vm174_vm1, %v711_v23  ;;  %1387 = vmatmul.msk.f32.gmra.mxu1 %vm174_vm1, %v693_v44  ;;  %v704_v23 = vld [vmem:[%s2271_s17 + $0xe8] sm:$0xff] }
 0x2d1   :  { %1373 = vmatmul.msk.f32.gmra.mxu0 %vm174_vm1, %v679_v58 }
 0x2d7   :  { %1406 = vmatmul.msk.f32.gmra.mxu2 %vm174_vm1, %v712_v24  ;;  %1388 = vmatmul.msk.f32.gmra.mxu1 %vm174_vm1, %v694_v47 }
 0x2d9   :  { %1374 = vmatmul.msk.f32.gmra.mxu0 %vm174_vm1, %v680_v62 }
 0x2df   :  { %1407 = vmatmul.msk.f32.gmra.mxu2 %vm174_vm1, %v713_v26  ;;  %1389 = vmatmul.msk.f32.gmra.mxu1 %vm174_vm1, %v695_v50  ;;  %v1486_v50 = vld [vmem:[%s2275_s20] ss:$0 sm:$0xff] }
 0x2e1   :  { %1375 = vmatmul.msk.f32.gmra.mxu0 %vm174_vm1, %v681_v2 }
 0x2e7   :  { %1408 = vmatmul.msk.f32.gmra.mxu2 %vm174_vm1, %v714_v27  ;;  %1390 = vmatmul.msk.f32.gmra.mxu1 %vm174_vm1, %v696_v54  ;;  %v687_v27 = vld [vmem:[%s2271_s17 + $0x60] sm:$0xff] }
 0x2e9   :  { %1376 = vmatmul.msk.f32.gmra.mxu0 %vm174_vm1, %v682_v6 }
 0x2ef   :  { %1409 = vmatmul.msk.f32.gmra.mxu2 %vm174_vm1, %v715_v28  ;;  %1391 = vmatmul.msk.f32.gmra.mxu1 %vm174_vm1, %v697_v59  ;;  %v705_v28 = vld [vmem:[%s2271_s17 + $0xf0] sm:$0xff] }
 0x2f1   :  { %1377 = vmatmul.msk.f32.gmra.mxu0 %vm174_vm1, %v683_v10  ;;  %v29_v10 = vstv %s2276_s21 }
 0x2f2   :  { %30 = vst [vmem:[#allocation2] sm:$0x1] %v29_v10 }
 0x2f7   :  { %1410 = vmatmul.msk.f32.gmra.mxu2 %vm174_vm1, %v716_v29  ;;  %1392 = vmatmul.msk.f32.gmra.mxu1 %vm174_vm1, %v698_v63 }
 0x2f9   :  { %1378 = vmatmul.msk.f32.gmra.mxu0 %vm174_vm1, %v684_v14 }
 0x2ff   :  { %1411 = vmatmul.msk.f32.gmra.mxu2 %vm174_vm1, %v717_v30  ;;  %1393 = vmatmul.msk.f32.gmra.mxu1 %vm174_vm1, %v699_v3  ;;  %v738_v30 = vld [vmem:[%s2271_s17 + $0x1f8] sm:$0xff] }
 0x301   :  { %1379 = vmatmul.msk.f32.gmra.mxu0 %vm174_vm1, %v685_v18 }
 0x307   :  { %1412 = vmatmul.msk.f32.gmra.mxu2 %vm174_vm1, %v718_v31  ;;  %1394 = vmatmul.msk.f32.gmra.mxu1 %vm174_vm1, %v700_v7 }
 0x309   :  { %1380 = vmatmul.msk.f32.gmra.mxu0 %vm174_vm1, %v686_v22 }
 0x30f   :  { %1413 = vmatmul.msk.f32.gmra.mxu2 %vm174_vm1, %v719_v33  ;;  %1395 = vmatmul.msk.f32.gmra.mxu1 %vm174_vm1, %v701_v11  ;;  %v706_v33 = vld [vmem:[%s2271_s17 + $0xf8] sm:$0xff] }
 0x311   :  { %1381 = vmatmul.msk.f32.gmra.mxu0 %vm174_vm1, %v687_v27 }
 0x317   :  { %1414 = vmatmul.msk.f32.gmra.mxu2 %vm174_vm1, %v720_v36  ;;  %1396 = vmatmul.msk.f32.gmra.mxu1 %vm174_vm1, %v702_v15 }
 0x319   :  { %1382 = vmatmul.msk.f32.gmra.mxu0 %vm174_vm1, %v688_v32 }
 0x31f   :  { %1415 = vmatmul.msk.f32.gmra.mxu2 %vm174_vm1, %v721_v39  ;;  %1397 = vmatmul.msk.f32.gmra.mxu1 %vm174_vm1, %v703_v19 }
 0x327   :  { %1416 = vmatmul.msk.f32.gmra.mxu2 %vm174_vm1, %v722_v42  ;;  %1398 = vmatmul.msk.f32.gmra.mxu1 %vm174_vm1, %v704_v23 }
 0x32c   :  { %v990_v26 = vpop.f32.mrf.mxu1 }
 0x32d   :  { %1155 = vst.msk [vmem:[%s2274_s22 + $0x70] sm:$0xff] %vm1140_vm6, %v990_v26 }
 0x32e   :  { %v948_v41 = vpop.f32.mrf.mxu0 }
 0x32f   :  { %1441 = vmatmul.msk.bf16.vlgmr.msra.gmra.mxu2 %vm174_vm1, %v1668_v57  ;;  %v727_v57 = vld [vmem:[%s2271_s17 + $0x1a0] sm:$0xff]  ;;  %1399 = vmatmul.msk.f32.gmra.mxu1 %vm174_vm1, %v705_v28  ;;  %1141 = vst.msk [vmem:[%s2274_s22] sm:$0xff] %vm1140_vm6, %v948_v41 }
 0x330   :  { %1421 = vmatmul.msk.f32.gmra.mxu3 %vm174_vm1, %v727_v57 }
 0x332   :  { %v1044_v48 = vpop.f32.mrf.mxu2 }
 0x333   :  { %1173 = vst.msk [vmem:[%s2274_s22 + $0x100] sm:$0xff] %vm1140_vm6, %v1044_v48  ;;  %v1092_v36 = vpop.f32.mrf.mxu3 }
 0x334   :  { %v993_v31 = vpop.f32.mrf.mxu1  ;;  %1189 = vst.msk [vmem:[%s2274_s22 + $0x180] sm:$0xff] %vm1140_vm6, %v1092_v36 }
 0x335   :  { %1156 = vst.msk [vmem:[%s2274_s22 + $0x78] sm:$0xff] %vm1140_vm6, %v993_v31 }
 0x336   :  { %v951_v46 = vpop.f32.mrf.mxu0 }
 0x337   :  { %1400 = vmatmul.msk.f32.gmra.mxu1 %vm174_vm1, %v706_v33  ;;  %1142 = vst.msk [vmem:[%s2274_s22 + $0x8] sm:$0xff] %vm1140_vm6, %v951_v46 }
 0x338   :  { %1422 = vmatmul.msk.f32.gmra.mxu3 %vm174_vm1, %v728_v52 }
 0x33a   :  { %v1047_v51 = vpop.f32.mrf.mxu2 }
 0x33b   :  { %1174 = vst.msk [vmem:[%s2274_s22 + $0x108] sm:$0xff] %vm1140_vm6, %v1047_v51  ;;  %v1095_v39 = vpop.f32.mrf.mxu3 }
 0x33c   :  { %v996_v35 = vpop.f32.mrf.mxu1  ;;  %1190 = vst.msk [vmem:[%s2274_s22 + $0x188] sm:$0xff] %vm1140_vm6, %v1095_v39 }
 0x33d   :  { %1157 = vst.msk [vmem:[%s2274_s22 + $0x80] sm:$0xff] %vm1140_vm6, %v996_v35 }
 0x33e   :  { %v954_v53 = vpop.f32.mrf.mxu0 }
 0x33f   :  { %1143 = vst.msk [vmem:[%s2274_s22 + $0x10] sm:$0xff] %vm1140_vm6, %v954_v53 }
 0x340   :  { %1423 = vmatmul.msk.f32.gmra.mxu3 %vm174_vm1, %v729_v56 }
 0x342   :  { %v1050_v55 = vpop.f32.mrf.mxu2 }
 0x343   :  { %1175 = vst.msk [vmem:[%s2274_s22 + $0x110] sm:$0xff] %vm1140_vm6, %v1050_v55  ;;  %v1098_v43 = vpop.f32.mrf.mxu3 }
 0x344   :  { %v999_v38 = vpop.f32.mrf.mxu1  ;;  %1191 = vst.msk [vmem:[%s2274_s22 + $0x190] sm:$0xff] %vm1140_vm6, %v1098_v43 }
 0x345   :  { %1158 = vst.msk [vmem:[%s2274_s22 + $0x88] sm:$0xff] %vm1140_vm6, %v999_v38 }
 0x346   :  { %v957_v59 = vpop.f32.mrf.mxu0 }
 0x347   :  { %1144 = vst.msk [vmem:[%s2274_s22 + $0x18] sm:$0xff] %vm1140_vm6, %v957_v59 }
 0x348   :  { %1424 = vmatmul.msk.f32.gmra.mxu3 %vm174_vm1, %v730_v61 }
 0x34a   :  { %v1053_v60 = vpop.f32.mrf.mxu2 }
 0x34b   :  { %1176 = vst.msk [vmem:[%s2274_s22 + $0x118] sm:$0xff] %vm1140_vm6, %v1053_v60  ;;  %v1101_v48 = vpop.f32.mrf.mxu3 }
 0x34c   :  { %v1002_v42 = vpop.f32.mrf.mxu1  ;;  %1192 = vst.msk [vmem:[%s2274_s22 + $0x198] sm:$0xff] %vm1140_vm6, %v1101_v48 }
 0x34d   :  { %1159 = vst.msk [vmem:[%s2274_s22 + $0x90] sm:$0xff] %vm1140_vm6, %v1002_v42 }
 0x34e   :  { %v960_v62 = vpop.f32.mrf.mxu0 }
 0x34f   :  { %1145 = vst.msk [vmem:[%s2274_s22 + $0x20] sm:$0xff] %vm1140_vm6, %v960_v62 }
 0x350   :  { %1425 = vmatmul.msk.f32.gmra.mxu3 %vm174_vm1, %v731_v1 }
 0x352   :  { %v1056_v0 = vpop.f32.mrf.mxu2 }
 0x353   :  { %1177 = vst.msk [vmem:[%s2274_s22 + $0x120] sm:$0xff] %vm1140_vm6, %v1056_v0 }
 0x354   :  { %v1005_v47 = vpop.f32.mrf.mxu1 }
 0x355   :  { %1160 = vst.msk [vmem:[%s2274_s22 + $0x98] sm:$0xff] %vm1140_vm6, %v1005_v47 }
 0x356   :  { %v963_v1 = vpop.f32.mrf.mxu0 }
 0x357   :  { %1146 = vst.msk [vmem:[%s2274_s22 + $0x28] sm:$0xff] %vm1140_vm6, %v963_v1 }
 0x358   :  { %1426 = vmatmul.msk.f32.gmra.mxu3 %vm174_vm1, %v732_v5 }
 0x35a   :  { %v1059_v4 = vpop.f32.mrf.mxu2 }
 0x35b   :  { %1178 = vst.msk [vmem:[%s2274_s22 + $0x128] sm:$0xff] %vm1140_vm6, %v1059_v4 }
 0x35c   :  { %v1008_v54 = vpop.f32.mrf.mxu1 }
 0x35d   :  { %1161 = vst.msk [vmem:[%s2274_s22 + $0xa0] sm:$0xff] %vm1140_vm6, %v1008_v54 }
 0x35e   :  { %v966_v4 = vpop.f32.mrf.mxu0 }
 0x35f   :  { %1147 = vst.msk [vmem:[%s2274_s22 + $0x30] sm:$0xff] %vm1140_vm6, %v966_v4 }
 0x360   :  { %1427 = vmatmul.msk.f32.gmra.mxu3 %vm174_vm1, %v733_v9 }
 0x362   :  { %v1062_v8 = vpop.f32.mrf.mxu2 }
 0x363   :  { %1179 = vst.msk [vmem:[%s2274_s22 + $0x130] sm:$0xff] %vm1140_vm6, %v1062_v8 }
 0x364   :  { %v1011_v60 = vpop.f32.mrf.mxu1 }
 0x365   :  { %1162 = vst.msk [vmem:[%s2274_s22 + $0xa8] sm:$0xff] %vm1140_vm6, %v1011_v60 }
 0x366   :  { %v969_v7 = vpop.f32.mrf.mxu0 }
 0x367   :  { %1148 = vst.msk [vmem:[%s2274_s22 + $0x38] sm:$0xff] %vm1140_vm6, %v969_v7 }
 0x368   :  { %1428 = vmatmul.msk.f32.gmra.mxu3 %vm174_vm1, %v734_v13 }
 0x36a   :  { %v1065_v12 = vpop.f32.mrf.mxu2 }
 0x36b   :  { %1180 = vst.msk [vmem:[%s2274_s22 + $0x138] sm:$0xff] %vm1140_vm6, %v1065_v12 }
 0x36c   :  { %v1014_v63 = vpop.f32.mrf.mxu1 }
 0x36d   :  { %1163 = vst.msk [vmem:[%s2274_s22 + $0xb0] sm:$0xff] %vm1140_vm6, %v1014_v63 }
 0x36e   :  { %v972_v11 = vpop.f32.mrf.mxu0 }
 0x36f   :  { %1149 = vst.msk [vmem:[%s2274_s22 + $0x40] sm:$0xff] %vm1140_vm6, %v972_v11 }
 0x370   :  { %1429 = vmatmul.msk.f32.gmra.mxu3 %vm174_vm1, %v735_v17 }
 0x372   :  { %v1068_v16 = vpop.f32.mrf.mxu2 }
 0x373   :  { %1181 = vst.msk [vmem:[%s2274_s22 + $0x140] sm:$0xff] %vm1140_vm6, %v1068_v16 }
 0x374   :  { %v1017_v2 = vpop.f32.mrf.mxu1 }
 0x375   :  { %1164 = vst.msk [vmem:[%s2274_s22 + $0xb8] sm:$0xff] %vm1140_vm6, %v1017_v2 }
 0x376   :  { %v975_v14 = vpop.f32.mrf.mxu0 }
 0x377   :  { %1150 = vst.msk [vmem:[%s2274_s22 + $0x48] sm:$0xff] %vm1140_vm6, %v975_v14 }
 0x378   :  { %1430 = vmatmul.msk.f32.gmra.mxu3 %vm174_vm1, %v736_v21 }
 0x37a   :  { %v1071_v20 = vpop.f32.mrf.mxu2 }
 0x37b   :  { %1182 = vst.msk [vmem:[%s2274_s22 + $0x148] sm:$0xff] %vm1140_vm6, %v1071_v20 }
 0x37c   :  { %v1020_v5 = vpop.f32.mrf.mxu1 }
 0x37d   :  { %1165 = vst.msk [vmem:[%s2274_s22 + $0xc0] sm:$0xff] %vm1140_vm6, %v1020_v5 }
 0x37e   :  { %v978_v17 = vpop.f32.mrf.mxu0 }
 0x37f   :  { %1151 = vst.msk [vmem:[%s2274_s22 + $0x50] sm:$0xff] %vm1140_vm6, %v978_v17 }
 0x380   :  { %1431 = vmatmul.msk.f32.gmra.mxu3 %vm174_vm1, %v737_v25 }
 0x382   :  { %v1074_v24 = vpop.f32.mrf.mxu2 }
 0x383   :  { %1183 = vst.msk [vmem:[%s2274_s22 + $0x150] sm:$0xff] %vm1140_vm6, %v1074_v24 }
 0x384   :  { %v1023_v8 = vpop.f32.mrf.mxu1 }
 0x385   :  { %1166 = vst.msk [vmem:[%s2274_s22 + $0xc8] sm:$0xff] %vm1140_vm6, %v1023_v8 }
 0x386   :  { %v981_v20 = vpop.f32.mrf.mxu0 }
 0x387   :  { %1152 = vst.msk [vmem:[%s2274_s22 + $0x58] sm:$0xff] %vm1140_vm6, %v981_v20 }
 0x388   :  { %1432 = vmatmul.msk.f32.gmra.mxu3 %vm174_vm1, %v738_v30  ;;  %vm1244_vm1 = vcmask 58368  }
 0x38a   :  { %v1077_v29 = vpop.f32.mrf.mxu2 }
 0x38b   :  { %1184 = vst.msk [vmem:[%s2274_s22 + $0x158] sm:$0xff] %vm1140_vm6, %v1077_v29  ;;  %v1487_v29 = vld [vmem:[#allocation2] ss:$0 sm:$0xff] }
 0x38c   :  { %v1026_v12 = vpop.f32.mrf.mxu1 }
 0x38d   :  { %1167 = vst.msk [vmem:[%s2274_s22 + $0xd0] sm:$0xff] %vm1140_vm6, %v1026_v12 }
 0x38e   :  { %v984_v23 = vpop.f32.mrf.mxu0 }
 0x38f   :  { %1153 = vst.msk [vmem:[%s2274_s22 + $0x60] sm:$0xff] %vm1140_vm6, %v984_v23 }
 0x392   :  { %v1080_v34 = vpop.f32.mrf.mxu2 }
 0x393   :  { %1185 = vst.msk [vmem:[%s2274_s22 + $0x160] sm:$0xff] %vm1140_vm6, %v1080_v34 }
 0x394   :  { %v1029_v15 = vpop.f32.mrf.mxu1 }
 0x395   :  { %1168 = vst.msk [vmem:[%s2274_s22 + $0xd8] sm:$0xff] %vm1140_vm6, %v1029_v15 }
 0x396   :  { %v987_v26 = vpop.f32.mrf.mxu0 }
 0x397   :  { %1154 = vst.msk [vmem:[%s2274_s22 + $0x68] sm:$0xff] %vm1140_vm6, %v987_v26 }
 0x39a   :  { %v1083_v37 = vpop.f32.mrf.mxu2 }
 0x39b   :  { %1186 = vst.msk [vmem:[%s2274_s22 + $0x168] sm:$0xff] %vm1140_vm6, %v1083_v37 }
 0x39c   :  { %v1032_v18 = vpop.f32.mrf.mxu1 }
 0x39d   :  { %1169 = vst.msk [vmem:[%s2274_s22 + $0xe0] sm:$0xff] %vm1140_vm6, %v1032_v18 }
 0x3a2   :  { %v1086_v40 = vpop.f32.mrf.mxu2 }
 0x3a3   :  { %1187 = vst.msk [vmem:[%s2274_s22 + $0x170] sm:$0xff] %vm1140_vm6, %v1086_v40 }
 0x3a4   :  { %v1035_v21 = vpop.f32.mrf.mxu1 }
 0x3a5   :  { %1170 = vst.msk [vmem:[%s2274_s22 + $0xe8] sm:$0xff] %vm1140_vm6, %v1035_v21 }
 0x3aa   :  { %v1089_v44 = vpop.f32.mrf.mxu2 }
 0x3ab   :  { %1188 = vst.msk [vmem:[%s2274_s22 + $0x178] sm:$0xff] %vm1140_vm6, %v1089_v44 }
 0x3ac   :  { %v1038_v24 = vpop.f32.mrf.mxu1 }
 0x3ad   :  { %1171 = vst.msk [vmem:[%s2274_s22 + $0xf0] sm:$0xff] %vm1140_vm6, %v1038_v24 }
 0x3b2   :  { %v1234_v57 = vpop.f32.mrf.mxu2 }
 0x3b3   :  { %v1235_v49 = vadd.f32 %v1485_v45, %v1234_v57  ;;  %v1104_v55 = vpop.f32.mrf.mxu3 }
 0x3b4   :  { %1193 = vst.msk [vmem:[%s2274_s22 + $0x1a0] sm:$0xff] %vm1140_vm6, %v1104_v55  ;;  %v1041_v27 = vpop.f32.mrf.mxu1 }
 0x3b5   :  { %v1238_v51 = vmax.f32 %v1235_v49, 0.0  ;;  %1172 = vst.msk [vmem:[%s2274_s22 + $0xf8] sm:$0xff] %vm1140_vm6, %v1041_v27 }
 0x3b7   :  { %v1243_v52 = vmul.f32 %v1486_v50, %v1238_v51 }
 0x3b9   :  { %v1245_v56 = vsel %vm1244_vm1, %v1243_v52, 0.0 }
 0x3ba   :  { %v1236_v58 = vpop.f32.mrf.mxu2  ;;  %1246 = vadd.xlane.f32.xlu0 %v1245_v56 }
 0x3bb   :  { %v1107_v61 = vpop.f32.mrf.mxu3 }
 0x3bc   :  { %1194 = vst.msk [vmem:[%s2274_s22 + $0x1a8] sm:$0xff] %vm1140_vm6, %v1107_v61 }
 0x3c3   :  { %v1110_v0 = vpop.f32.mrf.mxu3 }
 0x3c4   :  { %1195 = vst.msk [vmem:[%s2274_s22 + $0x1b0] sm:$0xff] %vm1140_vm6, %v1110_v0 }
 0x3cb   :  { %v1113_v3 = vpop.f32.mrf.mxu3 }
 0x3cc   :  { %1196 = vst.msk [vmem:[%s2274_s22 + $0x1b8] sm:$0xff] %vm1140_vm6, %v1113_v3 }
 0x3d3   :  { %v1116_v6 = vpop.f32.mrf.mxu3 }
 0x3d4   :  { %1197 = vst.msk [vmem:[%s2274_s22 + $0x1c0] sm:$0xff] %vm1140_vm6, %v1116_v6 }
 0x3db   :  { %v1119_v9 = vpop.f32.mrf.mxu3 }
 0x3dc   :  { %1198 = vst.msk [vmem:[%s2274_s22 + $0x1c8] sm:$0xff] %vm1140_vm6, %v1119_v9 }
 0x3e3   :  { %v1122_v13 = vpop.f32.mrf.mxu3 }
 0x3e4   :  { %1199 = vst.msk [vmem:[%s2274_s22 + $0x1d0] sm:$0xff] %vm1140_vm6, %v1122_v13 }
 0x3eb   :  { %v1125_v16 = vpop.f32.mrf.mxu3 }
 0x3ec   :  { %1200 = vst.msk [vmem:[%s2274_s22 + $0x1d8] sm:$0xff] %vm1140_vm6, %v1125_v16 }
 0x3f3   :  { %v1128_v19 = vpop.f32.mrf.mxu3 }
 0x3f4   :  { %1201 = vst.msk [vmem:[%s2274_s22 + $0x1e0] sm:$0xff] %vm1140_vm6, %v1128_v19 }
 0x3fb   :  { %v1131_v22 = vpop.f32.mrf.mxu3 }
 0x3fc   :  { %1202 = vst.msk [vmem:[%s2274_s22 + $0x1e8] sm:$0xff] %vm1140_vm6, %v1131_v22 }
 0x403   :  { %v1134_v25 = vpop.f32.mrf.mxu3 }
 0x404   :  { %1203 = vst.msk [vmem:[%s2274_s22 + $0x1f0] sm:$0xff] %vm1140_vm6, %v1134_v25 }
 0x40b   :  { %v1137_v28 = vpop.f32.mrf.mxu3 }
 0x40c   :  { %1204 = vst.msk [vmem:[%s2274_s22 + $0x1f8] sm:$0xff] %vm1140_vm6, %v1137_v28 }
 0x42d   :  { %v1247_v30 = vpop.xlane.xlu0 %1246 }
 0x42e   :  { %v1252_v31 = vadd.f32 %v1487_v29, %v1247_v30 }
 0x430   :  { %1254 = vst.msk [vmem:[%s2277_s23] sm:$0x3] %vm1253_vm12, %v1252_v31 }

</bundles_post_ra>
